<compile_context>
chip_gen: v7x
topology: tpu7x:2x2x1
jax: 0.10.0
libtpu: 0.0.40
codegen_flags: <defaults>
</compile_context>

<pallas_src>
import jax
import jax.numpy as jnp
from jax.experimental import pallas as pl
from jax.experimental.pallas import tpu as pltpu


def _round_up(x, m):
    return (x + m - 1) // m * m


def _bottleneck_kernel(x_ref, w1_ref, s1_ref, b1_ref,
                       w2_ref, s2_ref, b2_ref,
                       w3_ref, s3_ref, b3_ref,
                       out_ref, hp_ref):
    # x_ref block: (1, H, W, Cin_p) bf16 ; weights bf16 ; scale/bias f32
    _, H, W, Cin = x_ref.shape
    width = w1_ref.shape[1]
    Cout = w3_ref.shape[1]
    HW = H * W

    # Hoist the (small) BN scale/bias loads once.
    s1 = s1_ref[...]; b1 = b1_ref[...]
    s2 = s2_ref[...]; b2 = b2_ref[...]
    s3 = s3_ref[...]; b3 = b3_ref[...]

    x = x_ref[0]                               # (H, W, Cin) bf16
    xf = x.reshape(HW, Cin)                    # flatten spatial, lanes = C

    # ---- conv1 (1x1) + bn1 + relu : plain MXU matmul over channels --------
    h = jnp.dot(xf, w1_ref[...], preferred_element_type=jnp.float32)
    h = jnp.maximum(h * s1 + b1, 0.0)          # (HW, width) f32

    # ---- conv2 (3x3, stride=1, pad=1) + bn2 + relu -------------------------
    # Write the activation into a zero-padded f32 VMEM scratch once, then read
    # the 9 shifted windows as ref slices (no value-level padded-plane copies).
    hp_ref[...] = jnp.zeros_like(hp_ref)       # cheap; keeps the halo zero
    hp_ref[pl.ds(1, H), pl.ds(1, W), :] = h.reshape(H, W, width)

    acc = jnp.zeros((HW, width), jnp.float32)
    for dy in range(3):                        # static unroll: 9 MXU matmuls
        for dx in range(3):
            win = hp_ref[pl.ds(dy, H), pl.ds(dx, W), :]        # (H, W, width)
            acc = acc + jnp.dot(win.reshape(HW, width).astype(jnp.bfloat16),
                                w2_ref[dy * 3 + dx],
                                preferred_element_type=jnp.float32)
    h2 = jnp.maximum(acc * s2 + b2, 0.0)       # (HW, width) f32

    # ---- conv3 (1x1) + bn3 --------------------------------------------------
    h3 = jnp.dot(h2.astype(jnp.bfloat16), w3_ref[...],
                 preferred_element_type=jnp.float32)
    h3 = h3 * s3 + b3                          # (HW, Cout) f32

    # ---- residual add (identity path, Cin == Cout) + relu, in f32 ----------
    out = jnp.maximum(h3 + xf.astype(jnp.float32), 0.0)
    out_ref[0] = out.reshape(H, W, Cout)


def bottleneck_forward(x_nhwc, params):
    """Fused Bottleneck forward.

    x_nhwc: (N, H, W, Cin) float32, NHWC (channels-last).
    params: (w1, s1, b1, w2, s2, b2, w3, s3, b3) with
        w1 (Cin, width), w2 (3, 3, width, width) HWIO, w3 (width, Cout),
        s*/b* folded eval-mode BatchNorm scale/bias of shape (1, C).
    Returns (N, H, W, Cout) float32.
    """
    (w1, s1, b1, w2, s2, b2, w3, s3, b3) = params
    N, H, W, Cin = x_nhwc.shape
    width = w1.shape[1]
    Cout = w3.shape[1]
    assert Cin == Cout, "identity path requires inplanes == planes * expansion"

    LANE = 128
    Cin_p = _round_up(Cin, LANE)
    width_p = _round_up(width, LANE)
    Cout_p = _round_up(Cout, LANE)

    def pad2(a, rows, cols):
        return jnp.pad(a, ((0, rows - a.shape[0]), (0, cols - a.shape[1])))

    # Lane-pad channels once on the host side; cast matmul operands to bf16.
    xp = jnp.pad(x_nhwc, ((0, 0), (0, 0), (0, 0),
                          (0, Cin_p - Cin))).astype(jnp.bfloat16)
    w1p = pad2(w1, Cin_p, width_p).astype(jnp.bfloat16)
    w2f = w2.reshape(9, width, width)                     # (3,3,wi,wo) -> (9,wi,wo)
    w2p = jnp.pad(w2f, ((0, 0), (0, width_p - width),
                        (0, width_p - width))).astype(jnp.bfloat16)
    w3p = pad2(w3, width_p, Cout_p).astype(jnp.bfloat16)
    s1p = pad2(s1, 1, width_p); b1p = pad2(b1, 1, width_p)
    s2p = pad2(s2, 1, width_p); b2p = pad2(b2, 1, width_p)
    s3p = pad2(s3, 1, Cout_p);  b3p = pad2(b3, 1, Cout_p)

    # Padded-plane scratch, rounded up for friendly tiling.
    Hp2 = _round_up(H + 2, 8)
    Wp2 = _round_up(W + 2, 8)

    def full_spec(arr):
        nd = arr.ndim
        return pl.BlockSpec(arr.shape, lambda n, _nd=nd: (0,) * _nd)

    out_padded = pl.pallas_call(
        _bottleneck_kernel,
        out_shape=jax.ShapeDtypeStruct((N, H, W, Cout_p), jnp.float32),
        grid_spec=pltpu.PrefetchScalarGridSpec(
            num_scalar_prefetch=0,
            grid=(N,),
            in_specs=[
                pl.BlockSpec((1, H, W, Cin_p), lambda n: (n, 0, 0, 0)),
                full_spec(w1p), full_spec(s1p), full_spec(b1p),
                full_spec(w2p), full_spec(s2p), full_spec(b2p),
                full_spec(w3p), full_spec(s3p), full_spec(b3p),
            ],
            out_specs=pl.BlockSpec((1, H, W, Cout_p), lambda n: (n, 0, 0, 0)),
            scratch_shapes=[pltpu.VMEM((Hp2, Wp2, width_p), jnp.float32)],
        ),
        compiler_params=pltpu.CompilerParams(
            dimension_semantics=("parallel",),
            # Raise scoped VMEM above the 16/32 MiB defaults so full-plane
            # tiles survive at real ResNet shapes (kept below v7x's 64 MiB).
            vmem_limit_bytes=48 * 1024 * 1024,
        ),
    )(xp, w1p, s1p, b1p, w2p, s2p, b2p, w3p, s3p, b3p)

    # Slice off the lane padding (no-op when Cout is already a multiple of 128).
    return out_padded[..., :Cout]


def _fold_bn(gamma, beta, mean, var, eps=1e-5):
    scale = gamma / jnp.sqrt(var + eps)
    bias = beta - mean * scale
    return scale.reshape(1, -1), bias.reshape(1, -1)


def _reference_nhwc(x, w1, s1, b1, w2, s2, b2, w3, s3, b3):
    """Pure-JAX NHWC reference with the same bf16 matmul inputs / f32 math."""
    dn = ('NHWC', 'HWIO', 'NHWC')
    xb = x.astype(jnp.bfloat16)
    h = jax.lax.conv_general_dilated(
        xb, w1.reshape(1, 1, *w1.shape).astype(jnp.bfloat16), (1, 1), 'VALID',
        dimension_numbers=dn, preferred_element_type=jnp.float32)
    h = jnp.maximum(h * s1.reshape(1, 1, 1, -1) + b1.reshape(1, 1, 1, -1), 0.0)
    h = jax.lax.conv_general_dilated(
        h.astype(jnp.bfloat16), w2.astype(jnp.bfloat16), (1, 1),
        ((1, 1), (1, 1)), dimension_numbers=dn,
        preferred_element_type=jnp.float32)
    h = jnp.maximum(h * s2.reshape(1, 1, 1, -1) + b2.reshape(1, 1, 1, -1), 0.0)
    h = jax.lax.conv_general_dilated(
        h.astype(jnp.bfloat16), w3.reshape(1, 1, *w3.shape).astype(jnp.bfloat16),
        (1, 1), 'VALID', dimension_numbers=dn,
        preferred_element_type=jnp.float32)
    h = h * s3.reshape(1, 1, 1, -1) + b3.reshape(1, 1, 1, -1)
    return jnp.maximum(h + xb.astype(jnp.float32), 0.0)


if __name__ == "__main__":
    # Module config: inplanes = planes * expansion so the identity add is valid
    # (downsample=None), stride = 1.
    N, H, W = 2, 16, 16
    inplanes, planes, expansion, base_width = 16, 4, 4, 64
    width = int(planes * (base_width / 64.0))          # = 4
    outplanes = planes * expansion                     # = 16

    key = jax.random.PRNGKey(0)
    ks = jax.random.split(key, 10)

    # NHWC input (the surrounding model stays channels-last end-to-end).
    x = jax.random.normal(ks[0], (N, H, W, inplanes), jnp.float32)

    # Conv weights in matmul / HWIO layout (PyTorch OIHW -> transposed once).
    w1 = 0.1 * jax.random.normal(ks[1], (inplanes, width), jnp.float32)        # 1x1
    w2 = 0.1 * jax.random.normal(ks[2], (3, 3, width, width), jnp.float32)      # 3x3 HWIO
    w3 = 0.1 * jax.random.normal(ks[3], (width, outplanes), jnp.float32)        # 1x1

    # BatchNorm params (eval mode: running_mean=0, running_var=1).
    def bn_params(kg, kb, c):
        gamma = 1.0 + 0.1 * jax.random.normal(kg, (c,), jnp.float32)
        beta = 0.1 * jax.random.normal(kb, (c,), jnp.float32)
        mean = jnp.zeros((c,), jnp.float32)
        var = jnp.ones((c,), jnp.float32)
        return _fold_bn(gamma, beta, mean, var)

    s1, b1 = bn_params(ks[4], ks[5], width)
    s2, b2 = bn_params(ks[6], ks[7], width)
    s3, b3 = bn_params(ks[8], ks[9], outplanes)

    params = (w1, s1, b1, w2, s2, b2, w3, s3, b3)

    out = bottleneck_forward(x, params)
    out = jax.block_until_ready(out)

    ref = _reference_nhwc(x, *params)
    assert out.shape == (N, H, W, outplanes)
    max_err = float(jnp.max(jnp.abs(out - ref)))
    assert jnp.allclose(out, ref, atol=2e-3, rtol=2e-3), \
        f"mismatch vs reference, max abs err {max_err}"

    print("KERNEL_OK")
</pallas_src>

<mosaic_0001>
module attributes {stable_mosaic.version = 11 : i64} {
  func.func @_bottleneck_kernel(%arg0: i32, %arg1: memref<1x16x16x128xbf16, #tpu.memory_space<vmem>>, %arg2: memref<128x128xbf16, #tpu.memory_space<vmem>>, %arg3: memref<1x128xf32, #tpu.memory_space<vmem>>, %arg4: memref<1x128xf32, #tpu.memory_space<vmem>>, %arg5: memref<9x128x128xbf16, #tpu.memory_space<vmem>>, %arg6: memref<1x128xf32, #tpu.memory_space<vmem>>, %arg7: memref<1x128xf32, #tpu.memory_space<vmem>>, %arg8: memref<128x128xbf16, #tpu.memory_space<vmem>>, %arg9: memref<1x128xf32, #tpu.memory_space<vmem>>, %arg10: memref<1x128xf32, #tpu.memory_space<vmem>>, %arg11: memref<1x16x16x128xf32, #tpu.memory_space<vmem>>, %arg12: memref<24x24x128xf32, #tpu.memory_space<vmem>>) attributes {dimension_semantics = [#tpu.dimension_semantics<parallel>], iteration_bounds = array<i64: 2>, scalar_prefetch = 0 : i64, scratch_operands = 1 : i64, tpu.core_type = #tpu.core_type<tc>, window_params = [{transform_indices = @transform_0, window_bounds = array<i64: 1, 16, 16, 128>}, {pipeline_mode = #tpu.pipeline_mode<synchronous>, transform_indices = @transform_1, window_bounds = array<i64: 128, 128>}, {pipeline_mode = #tpu.pipeline_mode<synchronous>, transform_indices = @transform_2, window_bounds = array<i64: 1, 128>}, {pipeline_mode = #tpu.pipeline_mode<synchronous>, transform_indices = @transform_3, window_bounds = array<i64: 1, 128>}, {pipeline_mode = #tpu.pipeline_mode<synchronous>, transform_indices = @transform_4, window_bounds = array<i64: 9, 128, 128>}, {pipeline_mode = #tpu.pipeline_mode<synchronous>, transform_indices = @transform_5, window_bounds = array<i64: 1, 128>}, {pipeline_mode = #tpu.pipeline_mode<synchronous>, transform_indices = @transform_6, window_bounds = array<i64: 1, 128>}, {pipeline_mode = #tpu.pipeline_mode<synchronous>, transform_indices = @transform_7, window_bounds = array<i64: 128, 128>}, {pipeline_mode = #tpu.pipeline_mode<synchronous>, transform_indices = @transform_8, window_bounds = array<i64: 1, 128>}, {pipeline_mode = #tpu.pipeline_mode<synchronous>, transform_indices = @transform_9, window_bounds = array<i64: 1, 128>}, {transform_indices = @transform_10, window_bounds = array<i64: 1, 16, 16, 128>}]} {
    %c0 = arith.constant 0 : index
    %c0_0 = arith.constant 0 : index
    %0 = vector.load %arg3[%c0, %c0_0] : memref<1x128xf32, #tpu.memory_space<vmem>>, vector<1x128xf32>
    %c0_1 = arith.constant 0 : index
    %c0_2 = arith.constant 0 : index
    %1 = vector.load %arg4[%c0_1, %c0_2] : memref<1x128xf32, #tpu.memory_space<vmem>>, vector<1x128xf32>
    %c0_3 = arith.constant 0 : index
    %c0_4 = arith.constant 0 : index
    %2 = vector.load %arg6[%c0_3, %c0_4] : memref<1x128xf32, #tpu.memory_space<vmem>>, vector<1x128xf32>
    %c0_5 = arith.constant 0 : index
    %c0_6 = arith.constant 0 : index
    %3 = vector.load %arg7[%c0_5, %c0_6] : memref<1x128xf32, #tpu.memory_space<vmem>>, vector<1x128xf32>
    %c0_7 = arith.constant 0 : index
    %c0_8 = arith.constant 0 : index
    %4 = vector.load %arg9[%c0_7, %c0_8] : memref<1x128xf32, #tpu.memory_space<vmem>>, vector<1x128xf32>
    %c0_9 = arith.constant 0 : index
    %c0_10 = arith.constant 0 : index
    %5 = vector.load %arg10[%c0_9, %c0_10] : memref<1x128xf32, #tpu.memory_space<vmem>>, vector<1x128xf32>
    %c0_11 = arith.constant 0 : index
    %c0_12 = arith.constant 0 : index
    %c0_13 = arith.constant 0 : index
    %c0_14 = arith.constant 0 : index
    %6 = vector.load %arg1[%c0_11, %c0_12, %c0_13, %c0_14] : memref<1x16x16x128xbf16, #tpu.memory_space<vmem>>, vector<1x16x16x128xbf16>
    %7 = vector.shape_cast %6 : vector<1x16x16x128xbf16> to vector<16x16x128xbf16>
    %8 = vector.shape_cast %7 : vector<16x16x128xbf16> to vector<256x128xbf16>
    %c0_15 = arith.constant 0 : index
    %c0_16 = arith.constant 0 : index
    %9 = vector.load %arg2[%c0_15, %c0_16] : memref<128x128xbf16, #tpu.memory_space<vmem>>, vector<128x128xbf16>
    %cst = arith.constant dense<0.000000e+00> : vector<256x128xf32>
    %10 = tpu.matmul %8, %9, %cst {dimension_numbers = #tpu.dot_dimension_numbers<[1], [0], [0], [1], [0, 0, 1, 1], [], []>} : vector<256x128xbf16>, vector<128x128xbf16>, vector<256x128xf32> -> vector<256x128xf32>
    %11 = vector.broadcast %0 : vector<1x128xf32> to vector<256x128xf32>
    %12 = arith.mulf %10, %11 : vector<256x128xf32>
    %13 = vector.broadcast %1 : vector<1x128xf32> to vector<256x128xf32>
    %14 = arith.addf %12, %13 : vector<256x128xf32>
    %cst_17 = arith.constant 0.000000e+00 : f32
    %15 = vector.broadcast %cst_17 : f32 to vector<256x128xf32>
    %16 = arith.maximumf %14, %15 : vector<256x128xf32>
    %cst_18 = arith.constant 0.000000e+00 : f32
    %17 = vector.broadcast %cst_18 : f32 to vector<24x24x128xf32>
    %c0_19 = arith.constant 0 : index
    %c0_20 = arith.constant 0 : index
    %c0_21 = arith.constant 0 : index
    %18 = vector.load %arg12[%c0_19, %c0_20, %c0_21] : memref<24x24x128xf32, #tpu.memory_space<vmem>>, vector<24x24x128xf32>
    tpu.vector_store %arg12[%c0_19, %c0_20, %c0_21], %17 {strides = array<i32>} : memref<24x24x128xf32, #tpu.memory_space<vmem>>, vector<24x24x128xf32>,
    %19 = vector.shape_cast %16 : vector<256x128xf32> to vector<16x16x128xf32>
    %c1 = arith.constant 1 : index
    %c1_22 = arith.constant 1 : index
    %c0_23 = arith.constant 0 : index
    %20 = vector.load %arg12[%c1, %c1_22, %c0_23] : memref<24x24x128xf32, #tpu.memory_space<vmem>>, vector<16x16x128xf32>
    tpu.vector_store %arg12[%c1, %c1_22, %c0_23], %19 {strides = array<i32>} : memref<24x24x128xf32, #tpu.memory_space<vmem>>, vector<16x16x128xf32>,
    %cst_24 = arith.constant 0.000000e+00 : f32
    %21 = vector.broadcast %cst_24 : f32 to vector<256x128xf32>
    %c0_25 = arith.constant 0 : index
    %c0_26 = arith.constant 0 : index
    %c0_27 = arith.constant 0 : index
    %22 = vector.load %arg12[%c0_25, %c0_26, %c0_27] : memref<24x24x128xf32, #tpu.memory_space<vmem>>, vector<16x16x128xf32>
    %23 = vector.shape_cast %22 : vector<16x16x128xf32> to vector<256x128xf32>
    %24 = arith.truncf %23 : vector<256x128xf32> to vector<256x128xbf16>
    %c0_28 = arith.constant 0 : index
    %c0_29 = arith.constant 0 : index
    %c0_30 = arith.constant 0 : index
    %25 = vector.load %arg5[%c0_28, %c0_29, %c0_30] : memref<9x128x128xbf16, #tpu.memory_space<vmem>>, vector<1x128x128xbf16>
    %26 = vector.shape_cast %25 : vector<1x128x128xbf16> to vector<128x128xbf16>
    %cst_31 = arith.constant dense<0.000000e+00> : vector<256x128xf32>
    %27 = tpu.matmul %24, %26, %cst_31 {dimension_numbers = #tpu.dot_dimension_numbers<[1], [0], [0], [1], [0, 0, 1, 1], [], []>} : vector<256x128xbf16>, vector<128x128xbf16>, vector<256x128xf32> -> vector<256x128xf32>
    %28 = arith.addf %21, %27 : vector<256x128xf32>
    %c0_32 = arith.constant 0 : index
    %c1_33 = arith.constant 1 : index
    %c0_34 = arith.constant 0 : index
    %29 = vector.load %arg12[%c0_32, %c1_33, %c0_34] : memref<24x24x128xf32, #tpu.memory_space<vmem>>, vector<16x16x128xf32>
    %30 = vector.shape_cast %29 : vector<16x16x128xf32> to vector<256x128xf32>
    %31 = arith.truncf %30 : vector<256x128xf32> to vector<256x128xbf16>
    %c1_35 = arith.constant 1 : index
    %c0_36 = arith.constant 0 : index
    %c0_37 = arith.constant 0 : index
    %32 = vector.load %arg5[%c1_35, %c0_36, %c0_37] : memref<9x128x128xbf16, #tpu.memory_space<vmem>>, vector<1x128x128xbf16>
    %33 = vector.shape_cast %32 : vector<1x128x128xbf16> to vector<128x128xbf16>
    %cst_38 = arith.constant dense<0.000000e+00> : vector<256x128xf32>
    %34 = tpu.matmul %31, %33, %cst_38 {dimension_numbers = #tpu.dot_dimension_numbers<[1], [0], [0], [1], [0, 0, 1, 1], [], []>} : vector<256x128xbf16>, vector<128x128xbf16>, vector<256x128xf32> -> vector<256x128xf32>
    %35 = arith.addf %28, %34 : vector<256x128xf32>
    %c0_39 = arith.constant 0 : index
    %c2 = arith.constant 2 : index
    %c0_40 = arith.constant 0 : index
    %36 = vector.load %arg12[%c0_39, %c2, %c0_40] : memref<24x24x128xf32, #tpu.memory_space<vmem>>, vector<16x16x128xf32>
    %37 = vector.shape_cast %36 : vector<16x16x128xf32> to vector<256x128xf32>
    %38 = arith.truncf %37 : vector<256x128xf32> to vector<256x128xbf16>
    %c2_41 = arith.constant 2 : index
    %c0_42 = arith.constant 0 : index
    %c0_43 = arith.constant 0 : index
    %39 = vector.load %arg5[%c2_41, %c0_42, %c0_43] : memref<9x128x128xbf16, #tpu.memory_space<vmem>>, vector<1x128x128xbf16>
    %40 = vector.shape_cast %39 : vector<1x128x128xbf16> to vector<128x128xbf16>
    %cst_44 = arith.constant dense<0.000000e+00> : vector<256x128xf32>
    %41 = tpu.matmul %38, %40, %cst_44 {dimension_numbers = #tpu.dot_dimension_numbers<[1], [0], [0], [1], [0, 0, 1, 1], [], []>} : vector<256x128xbf16>, vector<128x128xbf16>, vector<256x128xf32> -> vector<256x128xf32>
    %42 = arith.addf %35, %41 : vector<256x128xf32>
    %c1_45 = arith.constant 1 : index
    %c0_46 = arith.constant 0 : index
    %c0_47 = arith.constant 0 : index
    %43 = vector.load %arg12[%c1_45, %c0_46, %c0_47] : memref<24x24x128xf32, #tpu.memory_space<vmem>>, vector<16x16x128xf32>
    %44 = vector.shape_cast %43 : vector<16x16x128xf32> to vector<256x128xf32>
    %45 = arith.truncf %44 : vector<256x128xf32> to vector<256x128xbf16>
    %c3 = arith.constant 3 : index
    %c0_48 = arith.constant 0 : index
    %c0_49 = arith.constant 0 : index
    %46 = vector.load %arg5[%c3, %c0_48, %c0_49] : memref<9x128x128xbf16, #tpu.memory_space<vmem>>, vector<1x128x128xbf16>
    %47 = vector.shape_cast %46 : vector<1x128x128xbf16> to vector<128x128xbf16>
    %cst_50 = arith.constant dense<0.000000e+00> : vector<256x128xf32>
    %48 = tpu.matmul %45, %47, %cst_50 {dimension_numbers = #tpu.dot_dimension_numbers<[1], [0], [0], [1], [0, 0, 1, 1], [], []>} : vector<256x128xbf16>, vector<128x128xbf16>, vector<256x128xf32> -> vector<256x128xf32>
    %49 = arith.addf %42, %48 : vector<256x128xf32>
    %c1_51 = arith.constant 1 : index
    %c1_52 = arith.constant 1 : index
    %c0_53 = arith.constant 0 : index
    %50 = vector.load %arg12[%c1_51, %c1_52, %c0_53] : memref<24x24x128xf32, #tpu.memory_space<vmem>>, vector<16x16x128xf32>
    %51 = vector.shape_cast %50 : vector<16x16x128xf32> to vector<256x128xf32>
    %52 = arith.truncf %51 : vector<256x128xf32> to vector<256x128xbf16>
    %c4 = arith.constant 4 : index
    %c0_54 = arith.constant 0 : index
    %c0_55 = arith.constant 0 : index
    %53 = vector.load %arg5[%c4, %c0_54, %c0_55] : memref<9x128x128xbf16, #tpu.memory_space<vmem>>, vector<1x128x128xbf16>
    %54 = vector.shape_cast %53 : vector<1x128x128xbf16> to vector<128x128xbf16>
    %cst_56 = arith.constant dense<0.000000e+00> : vector<256x128xf32>
    %55 = tpu.matmul %52, %54, %cst_56 {dimension_numbers = #tpu.dot_dimension_numbers<[1], [0], [0], [1], [0, 0, 1, 1], [], []>} : vector<256x128xbf16>, vector<128x128xbf16>, vector<256x128xf32> -> vector<256x128xf32>
    %56 = arith.addf %49, %55 : vector<256x128xf32>
    %c1_57 = arith.constant 1 : index
    %c2_58 = arith.constant 2 : index
    %c0_59 = arith.constant 0 : index
    %57 = vector.load %arg12[%c1_57, %c2_58, %c0_59] : memref<24x24x128xf32, #tpu.memory_space<vmem>>, vector<16x16x128xf32>
    %58 = vector.shape_cast %57 : vector<16x16x128xf32> to vector<256x128xf32>
    %59 = arith.truncf %58 : vector<256x128xf32> to vector<256x128xbf16>
    %c5 = arith.constant 5 : index
    %c0_60 = arith.constant 0 : index
    %c0_61 = arith.constant 0 : index
    %60 = vector.load %arg5[%c5, %c0_60, %c0_61] : memref<9x128x128xbf16, #tpu.memory_space<vmem>>, vector<1x128x128xbf16>
    %61 = vector.shape_cast %60 : vector<1x128x128xbf16> to vector<128x128xbf16>
    %cst_62 = arith.constant dense<0.000000e+00> : vector<256x128xf32>
    %62 = tpu.matmul %59, %61, %cst_62 {dimension_numbers = #tpu.dot_dimension_numbers<[1], [0], [0], [1], [0, 0, 1, 1], [], []>} : vector<256x128xbf16>, vector<128x128xbf16>, vector<256x128xf32> -> vector<256x128xf32>
    %63 = arith.addf %56, %62 : vector<256x128xf32>
    %c2_63 = arith.constant 2 : index
    %c0_64 = arith.constant 0 : index
    %c0_65 = arith.constant 0 : index
    %64 = vector.load %arg12[%c2_63, %c0_64, %c0_65] : memref<24x24x128xf32, #tpu.memory_space<vmem>>, vector<16x16x128xf32>
    %65 = vector.shape_cast %64 : vector<16x16x128xf32> to vector<256x128xf32>
    %66 = arith.truncf %65 : vector<256x128xf32> to vector<256x128xbf16>
    %c6 = arith.constant 6 : index
    %c0_66 = arith.constant 0 : index
    %c0_67 = arith.constant 0 : index
    %67 = vector.load %arg5[%c6, %c0_66, %c0_67] : memref<9x128x128xbf16, #tpu.memory_space<vmem>>, vector<1x128x128xbf16>
    %68 = vector.shape_cast %67 : vector<1x128x128xbf16> to vector<128x128xbf16>
    %cst_68 = arith.constant dense<0.000000e+00> : vector<256x128xf32>
    %69 = tpu.matmul %66, %68, %cst_68 {dimension_numbers = #tpu.dot_dimension_numbers<[1], [0], [0], [1], [0, 0, 1, 1], [], []>} : vector<256x128xbf16>, vector<128x128xbf16>, vector<256x128xf32> -> vector<256x128xf32>
    %70 = arith.addf %63, %69 : vector<256x128xf32>
    %c2_69 = arith.constant 2 : index
    %c1_70 = arith.constant 1 : index
    %c0_71 = arith.constant 0 : index
    %71 = vector.load %arg12[%c2_69, %c1_70, %c0_71] : memref<24x24x128xf32, #tpu.memory_space<vmem>>, vector<16x16x128xf32>
    %72 = vector.shape_cast %71 : vector<16x16x128xf32> to vector<256x128xf32>
    %73 = arith.truncf %72 : vector<256x128xf32> to vector<256x128xbf16>
    %c7 = arith.constant 7 : index
    %c0_72 = arith.constant 0 : index
    %c0_73 = arith.constant 0 : index
    %74 = vector.load %arg5[%c7, %c0_72, %c0_73] : memref<9x128x128xbf16, #tpu.memory_space<vmem>>, vector<1x128x128xbf16>
    %75 = vector.shape_cast %74 : vector<1x128x128xbf16> to vector<128x128xbf16>
    %cst_74 = arith.constant dense<0.000000e+00> : vector<256x128xf32>
    %76 = tpu.matmul %73, %75, %cst_74 {dimension_numbers = #tpu.dot_dimension_numbers<[1], [0], [0], [1], [0, 0, 1, 1], [], []>} : vector<256x128xbf16>, vector<128x128xbf16>, vector<256x128xf32> -> vector<256x128xf32>
    %77 = arith.addf %70, %76 : vector<256x128xf32>
    %c2_75 = arith.constant 2 : index
    %c2_76 = arith.constant 2 : index
    %c0_77 = arith.constant 0 : index
    %78 = vector.load %arg12[%c2_75, %c2_76, %c0_77] : memref<24x24x128xf32, #tpu.memory_space<vmem>>, vector<16x16x128xf32>
    %79 = vector.shape_cast %78 : vector<16x16x128xf32> to vector<256x128xf32>
    %80 = arith.truncf %79 : vector<256x128xf32> to vector<256x128xbf16>
    %c8 = arith.constant 8 : index
    %c0_78 = arith.constant 0 : index
    %c0_79 = arith.constant 0 : index
    %81 = vector.load %arg5[%c8, %c0_78, %c0_79] : memref<9x128x128xbf16, #tpu.memory_space<vmem>>, vector<1x128x128xbf16>
    %82 = vector.shape_cast %81 : vector<1x128x128xbf16> to vector<128x128xbf16>
    %cst_80 = arith.constant dense<0.000000e+00> : vector<256x128xf32>
    %83 = tpu.matmul %80, %82, %cst_80 {dimension_numbers = #tpu.dot_dimension_numbers<[1], [0], [0], [1], [0, 0, 1, 1], [], []>} : vector<256x128xbf16>, vector<128x128xbf16>, vector<256x128xf32> -> vector<256x128xf32>
    %84 = arith.addf %77, %83 : vector<256x128xf32>
    %85 = vector.broadcast %2 : vector<1x128xf32> to vector<256x128xf32>
    %86 = arith.mulf %84, %85 : vector<256x128xf32>
    %87 = vector.broadcast %3 : vector<1x128xf32> to vector<256x128xf32>
    %88 = arith.addf %86, %87 : vector<256x128xf32>
    %cst_81 = arith.constant 0.000000e+00 : f32
    %89 = vector.broadcast %cst_81 : f32 to vector<256x128xf32>
    %90 = arith.maximumf %88, %89 : vector<256x128xf32>
    %91 = arith.truncf %90 : vector<256x128xf32> to vector<256x128xbf16>
    %c0_82 = arith.constant 0 : index
    %c0_83 = arith.constant 0 : index
    %92 = vector.load %arg8[%c0_82, %c0_83] : memref<128x128xbf16, #tpu.memory_space<vmem>>, vector<128x128xbf16>
    %cst_84 = arith.constant dense<0.000000e+00> : vector<256x128xf32>
    %93 = tpu.matmul %91, %92, %cst_84 {dimension_numbers = #tpu.dot_dimension_numbers<[1], [0], [0], [1], [0, 0, 1, 1], [], []>} : vector<256x128xbf16>, vector<128x128xbf16>, vector<256x128xf32> -> vector<256x128xf32>
    %94 = vector.broadcast %4 : vector<1x128xf32> to vector<256x128xf32>
    %95 = arith.mulf %93, %94 : vector<256x128xf32>
    %96 = vector.broadcast %5 : vector<1x128xf32> to vector<256x128xf32>
    %97 = arith.addf %95, %96 : vector<256x128xf32>
    %98 = arith.extf %8 : vector<256x128xbf16> to vector<256x128xf32>
    %99 = arith.addf %97, %98 : vector<256x128xf32>
    %cst_85 = arith.constant 0.000000e+00 : f32
    %100 = vector.broadcast %cst_85 : f32 to vector<256x128xf32>
    %101 = arith.maximumf %99, %100 : vector<256x128xf32>
    %102 = vector.shape_cast %101 : vector<256x128xf32> to vector<16x16x128xf32>
    %c0_86 = arith.constant 0 : index
    %c0_87 = arith.constant 0 : index
    %c0_88 = arith.constant 0 : index
    %c0_89 = arith.constant 0 : index
    %103 = vector.load %arg11[%c0_86, %c0_87, %c0_88, %c0_89] : memref<1x16x16x128xf32, #tpu.memory_space<vmem>>, vector<1x16x16x128xf32>
    %104 = vector.shape_cast %103 : vector<1x16x16x128xf32> to vector<16x16x128xf32>
    %105 = vector.shape_cast %102 : vector<16x16x128xf32> to vector<1x16x16x128xf32>
    tpu.vector_store %arg11[%c0_86, %c0_87, %c0_88, %c0_89], %105 {strides = array<i32>} : memref<1x16x16x128xf32, #tpu.memory_space<vmem>>, vector<1x16x16x128xf32>,
    return
  }
  func.func @transform_0(%arg0: i32) -> (i32, i32, i32, i32) {
    %c0_i32 = arith.constant 0 : i32
    %c0_i32_0 = arith.constant 0 : i32
    %c0_i32_1 = arith.constant 0 : i32
    %c0_i32_2 = arith.constant 0 : i32
    return %arg0, %c0_i32, %c0_i32_0, %c0_i32_1 : i32, i32, i32, i32
  }
  func.func @transform_1(%arg0: i32) -> (i32, i32) {
    %c0_i32 = arith.constant 0 : i32
    %c0_i32_0 = arith.constant 0 : i32
    %c0_i32_1 = arith.constant 0 : i32
    return %c0_i32, %c0_i32_0 : i32, i32
  }
  func.func @transform_2(%arg0: i32) -> (i32, i32) {
    %c0_i32 = arith.constant 0 : i32
    %c0_i32_0 = arith.constant 0 : i32
    %c0_i32_1 = arith.constant 0 : i32
    return %c0_i32, %c0_i32_0 : i32, i32
  }
  func.func @transform_3(%arg0: i32) -> (i32, i32) {
    %c0_i32 = arith.constant 0 : i32
    %c0_i32_0 = arith.constant 0 : i32
    %c0_i32_1 = arith.constant 0 : i32
    return %c0_i32, %c0_i32_0 : i32, i32
  }
  func.func @transform_4(%arg0: i32) -> (i32, i32, i32) {
    %c0_i32 = arith.constant 0 : i32
    %c0_i32_0 = arith.constant 0 : i32
    %c0_i32_1 = arith.constant 0 : i32
    %c0_i32_2 = arith.constant 0 : i32
    return %c0_i32, %c0_i32_0, %c0_i32_1 : i32, i32, i32
  }
  func.func @transform_5(%arg0: i32) -> (i32, i32) {
    %c0_i32 = arith.constant 0 : i32
    %c0_i32_0 = arith.constant 0 : i32
    %c0_i32_1 = arith.constant 0 : i32
    return %c0_i32, %c0_i32_0 : i32, i32
  }
  func.func @transform_6(%arg0: i32) -> (i32, i32) {
    %c0_i32 = arith.constant 0 : i32
    %c0_i32_0 = arith.constant 0 : i32
    %c0_i32_1 = arith.constant 0 : i32
    return %c0_i32, %c0_i32_0 : i32, i32
  }
  func.func @transform_7(%arg0: i32) -> (i32, i32) {
    %c0_i32 = arith.constant 0 : i32
    %c0_i32_0 = arith.constant 0 : i32
    %c0_i32_1 = arith.constant 0 : i32
    return %c0_i32, %c0_i32_0 : i32, i32
  }
  func.func @transform_8(%arg0: i32) -> (i32, i32) {
    %c0_i32 = arith.constant 0 : i32
    %c0_i32_0 = arith.constant 0 : i32
    %c0_i32_1 = arith.constant 0 : i32
    return %c0_i32, %c0_i32_0 : i32, i32
  }
  func.func @transform_9(%arg0: i32) -> (i32, i32) {
    %c0_i32 = arith.constant 0 : i32
    %c0_i32_0 = arith.constant 0 : i32
    %c0_i32_1 = arith.constant 0 : i32
    return %c0_i32, %c0_i32_0 : i32, i32
  }
  func.func @transform_10(%arg0: i32) -> (i32, i32, i32, i32) {
    %c0_i32 = arith.constant 0 : i32
    %c0_i32_0 = arith.constant 0 : i32
    %c0_i32_1 = arith.constant 0 : i32
    %c0_i32_2 = arith.constant 0 : i32
    return %arg0, %c0_i32, %c0_i32_0, %c0_i32_1 : i32, i32, i32, i32
  }
}

</mosaic_0001>

<bundles_post_ra>
// kernel: tpu_custom_call.1
= control target key start
LH: loop header
LB: loop body
LE: loop exit
PB: predicated region body
PF: predicated region fallthrough
CT: control target
= control target key end

     0   :  { %s6920_s0 = inlined_call_operand.hbm [shape: bf16[2,16,16,128], index: 0, kind: input, shape index: {}]   ;;  %s6921_s1 = inlined_call_operand.hbm [shape: bf16[128,128], index: 1, kind: input, shape index: {}]   ;;  %s6922_s2 = inlined_call_operand.vmem [shape: f32[1,128], index: 2, kind: input, shape index: {}]   ;;  %s6923_s3 = inlined_call_operand.vmem [shape: f32[1,128], index: 3, kind: input, shape index: {}]   ;;  %s6924_s4 = inlined_call_operand.hbm [shape: bf16[9,128,128], index: 4, kind: input, shape index: {}]   ;;  %s6925_s5 = inlined_call_operand.vmem [shape: f32[1,128], index: 5, kind: input, shape index: {}]   ;;  %s6926_s6 = inlined_call_operand.vmem [shape: f32[1,128], index: 6, kind: input, shape index: {}]   ;;  %s6927_s7 = inlined_call_operand.hbm [shape: bf16[128,128], index: 7, kind: input, shape index: {}]   ;;  %s6928_s8 = inlined_call_operand.vmem [shape: f32[1,128], index: 8, kind: input, shape index: {}]   ;;  %s6929_s9 = inlined_call_operand.vmem [shape: f32[1,128], index: 9, kind: input, shape index: {}]   ;;  %s6930_s10 = inlined_call_operand.hbm [shape: f32[2,16,16,128], index: 10, kind: output, shape index: {}]  }
   0x1   :  { %6937 = sst [smem:[#allocation18_spill]] %s6929_s9 }
   0x2   :  { %6938 = sst [smem:[#allocation19_spill]] %s6930_s10 }
   0x3   :  { %15 = vsyncpa [#allocation4], 0 }
   0x4   :  { %17 = vsyncpa [#allocation4 + $0x1], 0 }
   0x5   :  { %18 = vsyncpa [#allocation7], 0 }
   0x6   :  { %19 = vsyncpa [#allocation10], 0 }
   0x7   :  { %20 = vsyncpa [#allocation5], 0 }
   0x8   :  { %22 = vsyncpa [#allocation5 + $0x1], 0  ;;  %s6024_s13 = smov 0   ;;  %s6026_s14 = smov 0  }
   0x9   :  { %s6028_s15 = smov 0   ;;  %s6030_s16 = smov 0  }
   0xa LB: > { %6939 = sst [smem:[#allocation16_spill]] %s5945_s13  ;;  %s6045_s17 = sadd.s32 4294967295, %s5957_s16   ;;  %s5957_s16 = sphi %s6030_s16, %s6965_s16   ;;  %s5953_s15 = sphi %s6028_s15, %s6964_s15   ;;  %s5949_s14 = sphi %s6026_s14, %s6963_s14   ;;  %s5945_s13 = sphi %s6024_s13, %s6962_s13  }
   0xb   : > { %s4354_s18 = sadd.s32 4294967294, %s5957_s16   ;;  %p48_p0 = scmp.ne.s32.totalorder %s5949_s14, %s5945_s13 }
   0xc   : > { %p6931_p1 = scmp.eq.s32.totalorder %s6045_s17, 0  ;;  %p267_p3 = scmp.eq.s32.totalorder %s4354_s18, 1 }
   0xd   : > { %p4355_p5 = scmp.ge.s32.totalorder %s5957_s16, 1  ;;  %p274_p7 = scmp.lt.s32.totalorder %s5957_s16, 3 }
   0xe   : > { %p6054_p4 = por %p6931_p1, %p48_p0  ;;  %p6059_p6 = por %p267_p3, %p48_p0 }
   0xf   : > { %p6064_p8 = pnand %p4355_p5, %p274_p7  ;;  %s5959_s22 = smov [#allocation6]  }
  0x10   : > { %s6940_s19 = scalar_select %p6054_p4, 1, 0 }
  0x11   : > { %s6941_s20 = scalar_select %p6059_p6, 1, 0 }
  0x12   : > { %s6943_s21 = scalar_select %p6064_p8, 1, 0 }
  0x13   : > { %6942 = sst [smem:[#allocation17_spill]] %s6941_s20  ;;  %s286_s23 = sshll.u32 %s5959_s22, 4  ;;  %s6068_s23 = int_to_ptr.vmem [resolvable:$true] %s286_s23 }
  0x14   : > { %p5566_p9 = pneg %p6064_p8  ;;  %s5960_s25 = smov [#allocation8]  }
  0x15   : > { %s305_s26 = sshll.u32 %s5960_s25, 4  ;;  %s5961_s27 = smov [#allocation9]   ;;  %s6079_s26 = int_to_ptr.vmem [resolvable:$true] %s305_s26 }
  0x16   : > { %p6075_p11 = pnand %p5566_p9, %p6931_p1  ;;  %s6081_s28 = sshll.u32 %s5961_s27, 4  ;;  %s325_s28 = int_to_ptr.vmem [resolvable:$true] %s6081_s28 }
  0x17   : > { %s5769_s11 = scalar_lea.hbm %s6921_s1, 1024 }
  0x18   : > { %p5770_p12 = scmp.ne.s32.totalorder %s6921_s1, %s5769_s11  ;;  %p6091_p13 = pneg %p6075_p11 }
  0x19   : > { %p5776_p5 = scmp.lt.u32.totalorder %s5769_s11, %s6921_s1 }
  0x1a   : > { %p5772_p0 = pnand %p6091_p13, %p5770_p12 }
  0x1c   : > { %p5773_p3 = pneg %p5772_p0 }
  0x1e   : > { %p5778_p7 = pnand %p5776_p5, %p5773_p3 }
  0x20   : > { %5781 = shalt.err (!%p5778_p7)
}
  0x21   : > { %s5782_s29 = scalar_lea.vmem %s6068_s23, 1024  ;;  %p5790_p2 = scmp.lt.s32.totalorder %s6068_s23, %s6068_s23 }
  0x22   : > { %p5783_p9 = scmp.ne.s32.totalorder %s6068_s23, %s5782_s29  ;;  %p5791_p6 = scmp.lt.s32.totalorder %s5782_s29, %s5782_s29 }
  0x24   : > { %p5785_p10 = pnand %p5783_p9, %p6091_p13  ;;  %p5792_p12 = por %p5791_p6, %p5790_p2 }
  0x26   : > { %p5786_p1 = pneg %p5785_p10 }
  0x28   : > { %p5793_p0 = pnand %p5792_p12, %p5786_p1 }
  0x2a   : > { %5796 = shalt.err (!%p5793_p0)
}
  0x2b   : > { %s5962_s30 = smov 64   ;;  %s5963_s11 = smov 4  }
  0x2c   : > { %5569 = dma.hbm_to_vmem [thread:$0]  (!%p6075_p11), %s6921_s1, 1024, %s6068_s23, [#allocation7], %s5962_s30, %s5962_s30, %s5963_s11  }
  0x2d   : > { %s5797_s29 = scalar_lea.hbm %s6924_s4, 9216 }
  0x2e   : > { %p5798_p1 = scmp.ne.s32.totalorder %s6924_s4, %s5797_s29  ;;  %p5804_p10 = scmp.lt.u32.totalorder %s5797_s29, %s6924_s4 }
  0x30   : > { %p5800_p2 = pnand %p5798_p1, %p6091_p13 }
  0x32   : > { %p5801_p6 = pneg %p5800_p2 }
  0x34   : > { %p5806_p3 = pnand %p5804_p10, %p5801_p6 }
  0x36   : > { %5809 = shalt.err (!%p5806_p3)
}
  0x37   : > { %s5810_s23 = scalar_lea.vmem %s6079_s26, 9216  ;;  %p5818_p12 = scmp.lt.s32.totalorder %s6079_s26, %s6079_s26 }
  0x38   : > { %p5811_p5 = scmp.ne.s32.totalorder %s6079_s26, %s5810_s23  ;;  %p5819_p0 = scmp.lt.s32.totalorder %s5810_s23, %s5810_s23 }
  0x3a   : > { %p5813_p7 = pnand %p5811_p5, %p6091_p13  ;;  %p5820_p1 = por %p5819_p0, %p5818_p12 }
  0x3c   : > { %p5814_p9 = pneg %p5813_p7 }
  0x3e   : > { %p5821_p2 = pnand %p5820_p1, %p5814_p9 }
  0x40   : > { %5824 = shalt.err (!%p5821_p2)
}
  0x41   : > { %5572 = dma.hbm_to_vmem [thread:$0]  (!%p6075_p11), %s6924_s4, 9216, %s6079_s26, [#allocation7], %s5962_s30, %s5962_s30, %s5963_s11  }
  0x42   : > { %s5825_s12 = scalar_lea.hbm %s6927_s7, 1024 }
  0x43   : > { %p5826_p6 = scmp.ne.s32.totalorder %s6927_s7, %s5825_s12  ;;  %p5832_p5 = scmp.lt.u32.totalorder %s5825_s12, %s6927_s7 }
  0x45   : > { %p5828_p10 = pnand %p5826_p6, %p6091_p13 }
  0x47   : > { %p5829_p3 = pneg %p5828_p10 }
  0x49   : > { %p5834_p7 = pnand %p5832_p5, %p5829_p3 }
  0x4b   : > { %5837 = shalt.err (!%p5834_p7)
}
  0x4c   : > { %s5838_s23 = scalar_lea.vmem %s325_s28, 1024  ;;  %p5846_p1 = scmp.lt.s32.totalorder %s325_s28, %s325_s28 }
  0x4d   : > { %p5839_p9 = scmp.ne.s32.totalorder %s325_s28, %s5838_s23  ;;  %p5847_p2 = scmp.lt.s32.totalorder %s5838_s23, %s5838_s23 }
  0x4f   : > { %p5841_p12 = pnand %p5839_p9, %p6091_p13  ;;  %p5848_p4 = por %p5847_p2, %p5846_p1 }
  0x51   : > { %p5842_p0 = pneg %p5841_p12 }
  0x53   : > { %p5849_p8 = pnand %p5848_p4, %p5842_p0 }
  0x55   : > { %5852 = shalt.err (!%p5849_p8)
}
  0x56   : > { %5575 = dma.hbm_to_vmem [thread:$0]  (!%p6075_p11), %s6927_s7, 1024, %s325_s28, [#allocation10], %s5962_s30, %s5962_s30, %s5963_s11  }
  0x57   : > { %s6164_s22 = sadd.s32 1, %s5957_s16   ;;  %s35_s10 = sadd.s32 1, %s5953_s15 }
  0x58   : > { %s32_s24 = ssub.s32 %s5957_s16, %s6164_s22  ;;  %p42_p8 = scmp.ne.s32.totalorder %s5953_s15, %s5949_s14 }
  0x59   : > { %p33_p4 = scmp.eq.s32.totalorder %s32_s24, 0  ;;  %p43_p13 = scmp.eq.s32.totalorder %s5957_s16, 0 }
  0x5a   : > { %p5587_p6 = scmp.lt.s32.totalorder %s5957_s16, 2  ;;  %p6946_p3 = scmp.eq.s32.totalorder %s6045_s17, 1 }
  0x5b   : > { %s6174_s13 = scalar_select %p33_p4, %s5953_s15, %s35_s10  }
  0x5c   : > { %p44_p10 = por %p43_p13, %p42_p8  ;;  %p6178_p5 = por %p6946_p3, %p42_p8 }
  0x5d   : > { %s344_s12 = sand.u32 1, %s5953_s15   ;;  %s4484_s18 = sshll.u32 %s5957_s16, 11 }
  0x5e   : > { %s4360_s28 = sshll.u32 %s344_s12, 7  ;;  %s6187_s29 = scalar_lea.hbm %s6920_s0, %s4484_s18 }
  0x5f   : > { %s348_s23 = scalar_lea.vmem [#allocation3], %s4360_s28  ;;  %p6189_p11 = pnand %p5587_p6, %p44_p10 }
  0x60   : > { %s355_s26 = sshll.u32 %s348_s23, 4  ;;  %s6195_s24 = scalar_lea.sflag [#allocation4], %s344_s12  ;;  %s6193_s26 = int_to_ptr.vmem [resolvable:$true] %s355_s26 }
  0x61   : > { %s5853_s10 = scalar_lea.hbm %s6187_s29, 2048  ;;  %p5855_p9 = pneg %p6189_p11 }
  0x62   : > { %p5854_p7 = scmp.ne.s32.totalorder %s6187_s29, %s5853_s10  ;;  %s5858_s25 = scalar_lea.hbm %s6920_s0, 4096 }
  0x63   : > { %p5859_p1 = scmp.lt.u32.totalorder %s6187_s29, %s6920_s0  ;;  %p5860_p2 = scmp.lt.u32.totalorder %s5858_s25, %s5853_s10 }
  0x64   : > { %p5856_p12 = pnand %p5855_p9, %p5854_p7  ;;  %p5862_p8 = scmp.lt.u32.totalorder %s5853_s10, %s6187_s29 }
  0x65   : > { %p5861_p4 = por %p5860_p2, %p5859_p1 }
  0x66   : > { %p5857_p0 = pneg %p5856_p12 }
  0x67   : > { %p5863_p13 = por %p5862_p8, %p5861_p4 }
  0x69   : > { %p5864_p6 = pnand %p5863_p13, %p5857_p0 }
  0x6b   : > { %5867 = shalt.err (!%p5864_p6)
}
  0x6c   : > { %s5868_s12 = scalar_lea.vmem %s6193_s26, 2048  ;;  %s5964_s18 = smov [#allocation3]  }
  0x6d   : > { %p5869_p10 = scmp.ne.s32.totalorder %s6193_s26, %s5868_s12  ;;  %s5873_s28 = sshll.u32 %s5964_s18, 4  ;;  %s5874_s28 = int_to_ptr.vmem [resolvable:$false] %s5873_s28 }
  0x6e   : > { %s5875_s27 = scalar_lea.vmem %s5874_s28, 4096  ;;  %p5876_p12 = scmp.lt.s32.totalorder %s6193_s26, %s5874_s28 }
  0x6f   : > { %p5871_p3 = pnand %p5869_p10, %p5855_p9  ;;  %p5877_p1 = scmp.lt.s32.totalorder %s5875_s27, %s5868_s12 }
  0x71   : > { %p5872_p7 = pneg %p5871_p3  ;;  %p5878_p2 = por %p5877_p1, %p5876_p12 }
  0x73   : > { %p5879_p4 = pnand %p5878_p2, %p5872_p7 }
  0x75   : > { %5882 = shalt.err (!%p5879_p4)
}
  0x76   : > { %5579 = dma.hbm_to_vmem [thread:$0]  (!%p6189_p11), %s6187_s29, 2048, %s6193_s26, %s6195_s24, %s5962_s30, %s5962_s30, %s5963_s11  }
  0x77   : > { %p6949_p9 = scmp.ne.s32.totalorder %s6943_s21, 0 }
  0x78   : > { %s6229_s10 = sand.u32 (!%p6949_p9), 1, %s5949_s14   ;;  %p6950_p0 = scmp.ne.s32.totalorder (!%p6949_p9), %s6940_s19, 0 }
  0x79   : > { %367 = sbr.rel (%p6949_p9) target bundleno = 1241 (0x4d9), region = 60  ;;  %s4364_s25 = sshll.u32 (!%p6949_p9), %s6229_s10, 7 }
  0x7a   : > { %s370_s23 = scalar_lea.sflag (!%p6949_p9), [#allocation4], %s6229_s10  ;;  %s6233_s12 = scalar_lea.vmem (!%p6949_p9), [#allocation3], %s4364_s25 }
  0x80   : > { %5928 = dma.done.wait (%p6950_p0), %s370_s23, 2048  }
  0x81   : > { %5930 = vsyncadd (%p6950_p0), %s370_s23, 4294965248  ;;  %p6951_p11 = scmp.eq.s32.totalorder %s6045_s17, 0 }
  0x83   : > { %5932 = dma.done.wait (%p6951_p11), [#allocation7], 10240   ;;  %p6952_p8 = pmov %p6951_p11 }
  0x85   : > { %5934 = vsyncadd (%p6952_p8), [#allocation7], 4294957056  ;;  %p6953_p13 = pmov %p6952_p8 }
  0x86   : > { %p6954_p6 = pmov %p6952_p8 }
  0x87   : > { %5936 = dma.done.wait (%p6953_p13), [#allocation10], 1024  }
  0x88   : > { %5938 = vsyncadd (%p6954_p6), [#allocation10], 4294966272  ;;  %v5965_v0 = vmov 0.0   ;;  %v5632_v1 = vld [vmem:[#allocation6] sm:$0xff]   ;;  %v5633_v2 = vld [vmem:[#allocation6 + $0x8] sm:$0xff]   ;;  %s6955_s23 = sld [smem:[#allocation18_spill]] }
  0x89   : > { %944 = vst [vmem:[#allocation2 + $0x1b0] sm:$0xff] %v5965_v0  ;;  %890 = vst [vmem:[#allocation2] sm:$0xff] %v5965_v0  ;;  %4750 = vmatprep.subr.bf16.mxu0 %v5632_v1  ;;  %v5634_v3 = vld [vmem:[#allocation6 + $0x10] sm:$0xff]   ;;  %v5635_v4 = vld [vmem:[#allocation6 + $0x18] sm:$0xff]   ;;  %s4368_s19 = sshll.u32 %s6229_s10, 8  ;;  %s6956_s26 = sld [smem:[#allocation19_spill]] }
  0x8a   : > { %891 = vst [vmem:[#allocation2 + $0x8] sm:$0xff] %v5965_v0  ;;  %892 = vst [vmem:[#allocation2 + $0x10] sm:$0xff] %v5965_v0  ;;  %4751 = vmatpush3.bf16.msra.mxu0 %v5632_v1  ;;  %v429_v5 = vld [vmem:[%s6233_s12] sm:$0xff]   ;;  %v5637_v7 = vld [vmem:[#allocation6 + $0x28] sm:$0xff]   ;;  %s6766_s21 = scalar_lea.vmem [#allocation11], %s4368_s19  ;;  %s5966_s18 = smov [#allocation11]  }
  0x8b   : > { %893 = vst [vmem:[#allocation2 + $0x18] sm:$0xff] %v5965_v0  ;;  %894 = vst [vmem:[#allocation2 + $0x20] sm:$0xff] %v5965_v0  ;;  %4752 = vmatprep.subr.bf16.mxu0 %v5633_v2  ;;  %4766 = vmatprep.mubr.bf16.mxu0 %v429_v5  ;;  %v5636_v6 = vld [vmem:[#allocation6 + $0x20] sm:$0xff]   ;;  %v5638_v8 = vld [vmem:[#allocation6 + $0x30] sm:$0xff]   ;;  %s4252_s30 = sshll.u32 %s6766_s21, 4  ;;  %s5887_s28 = sshll.u32 %s5966_s18, 4  ;;  %s6873_s30 = int_to_ptr.vmem [resolvable:$true] %s4252_s30  ;;  %s5888_s28 = int_to_ptr.vmem [resolvable:$false] %s5887_s28 }
  0x8c   : > { %895 = vst [vmem:[#allocation2 + $0x28] sm:$0xff] %v5965_v0  ;;  %896 = vst [vmem:[#allocation2 + $0x30] sm:$0xff] %v5965_v0  ;;  %v5639_v9 = vld [vmem:[#allocation6 + $0x38] sm:$0xff]   ;;  %v431_v10 = vld [vmem:[%s6233_s12 + $0x8] sm:$0xff]   ;;  %s5883_s24 = scalar_lea.vmem %s6873_s30, 4096  ;;  %s5889_s27 = scalar_lea.vmem %s5888_s28, 8192 }
  0x8d   : > { %897 = vst [vmem:[#allocation2 + $0x38] sm:$0xff] %v5965_v0  ;;  %898 = vst [vmem:[#allocation2 + $0x40] sm:$0xff] %v5965_v0  ;;  %v433_v11 = vld [vmem:[%s6233_s12 + $0x10] sm:$0xff]   ;;  %v5656_v12 = vld [vmem:[#allocation8 + $0x40] sm:$0xff]   ;;  %p5884_p10 = scmp.ne.s32.totalorder %s6873_s30, %s5883_s24  ;;  %p5890_p12 = scmp.lt.s32.totalorder %s6873_s30, %s5888_s28 }
  0x8e   : > { %899 = vst [vmem:[#allocation2 + $0x48] sm:$0xff] %v5965_v0  ;;  %900 = vst [vmem:[#allocation2 + $0x50] sm:$0xff] %v5965_v0  ;;  %4753 = vmatpush3.bf16.msra.mxu0 %v5633_v2  ;;  %v5657_v13 = vld [vmem:[#allocation8 + $0x48] sm:$0xff]   ;;  %v435_v14 = vld [vmem:[%s6233_s12 + $0x18] sm:$0xff]   ;;  %p5891_p1 = scmp.lt.s32.totalorder %s5889_s27, %s5883_s24 }
  0x8f   : > { %901 = vst [vmem:[#allocation2 + $0x58] sm:$0xff] %v5965_v0  ;;  %902 = vst [vmem:[#allocation2 + $0x60] sm:$0xff] %v5965_v0  ;;  %4754 = vmatprep.subr.bf16.mxu0 %v5634_v3  ;;  %v437_v15 = vld [vmem:[%s6233_s12 + $0x20] sm:$0xff]   ;;  %v5658_v16 = vld [vmem:[#allocation8 + $0x50] sm:$0xff]   ;;  %p5885_p3 = pnand %p5884_p10, %p6178_p5 }
  0x90   : > { %903 = vst [vmem:[#allocation2 + $0x68] sm:$0xff] %v5965_v0  ;;  %904 = vst [vmem:[#allocation2 + $0x70] sm:$0xff] %v5965_v0  ;;  %v439_v17 = vld [vmem:[%s6233_s12 + $0x28] sm:$0xff]   ;;  %v441_v18 = vld [vmem:[%s6233_s12 + $0x30] sm:$0xff]   ;;  %p5892_p2 = por %p5891_p1, %p5890_p12 }
  0x91   : > { %905 = vst [vmem:[#allocation2 + $0x78] sm:$0xff] %v5965_v0  ;;  %906 = vst [vmem:[#allocation2 + $0x80] sm:$0xff] %v5965_v0  ;;  %v443_v19 = vld [vmem:[%s6233_s12 + $0x38] sm:$0xff]   ;;  %v445_v20 = vld [vmem:[%s6233_s12 + $0x40] sm:$0xff]   ;;  %p5886_p7 = pneg %p5885_p3 }
  0x92   : > { %907 = vst [vmem:[#allocation2 + $0x88] sm:$0xff] %v5965_v0  ;;  %908 = vst [vmem:[#allocation2 + $0x90] sm:$0xff] %v5965_v0  ;;  %4755 = vmatpush3.bf16.msra.mxu0 %v5634_v3  ;;  %v447_v21 = vld [vmem:[%s6233_s12 + $0x48] sm:$0xff]   ;;  %v449_v22 = vld [vmem:[%s6233_s12 + $0x50] sm:$0xff]  }
  0x93   : > { %909 = vst [vmem:[#allocation2 + $0x98] sm:$0xff] %v5965_v0  ;;  %910 = vst [vmem:[#allocation2 + $0xa0] sm:$0xff] %v5965_v0  ;;  %4756 = vmatprep.subr.bf16.mxu0 %v5635_v4  ;;  %v451_v23 = vld [vmem:[%s6233_s12 + $0x58] sm:$0xff]   ;;  %v453_v24 = vld [vmem:[%s6233_s12 + $0x60] sm:$0xff]   ;;  %p5893_p4 = pnand %p5892_p2, %p5886_p7 }
  0x94   : > { %911 = vst [vmem:[#allocation2 + $0xa8] sm:$0xff] %v5965_v0  ;;  %912 = vst [vmem:[#allocation2 + $0xb0] sm:$0xff] %v5965_v0  ;;  %v455_v25 = vld [vmem:[%s6233_s12 + $0x68] sm:$0xff]   ;;  %v457_v26 = vld [vmem:[%s6233_s12 + $0x70] sm:$0xff]  }
  0x95   : > { %913 = vst [vmem:[#allocation2 + $0xb8] sm:$0xff] %v5965_v0  ;;  %914 = vst [vmem:[#allocation2 + $0xc0] sm:$0xff] %v5965_v0  ;;  %v459_v27 = vld [vmem:[%s6233_s12 + $0x78] sm:$0xff]   ;;  %v5660_v29 = vld [vmem:[#allocation8 + $0x60] sm:$0xff]  }
  0x96   : > { %915 = vst [vmem:[#allocation2 + $0xc8] sm:$0xff] %v5965_v0  ;;  %916 = vst [vmem:[#allocation2 + $0xd0] sm:$0xff] %v5965_v0  ;;  %4757 = vmatpush3.bf16.msra.mxu0 %v5635_v4  ;;  %v5659_v28 = vld [vmem:[#allocation8 + $0x58] sm:$0xff]   ;;  %v5661_v30 = vld [vmem:[#allocation8 + $0x68] sm:$0xff]  }
  0x97   : > { %917 = vst [vmem:[#allocation2 + $0xd8] sm:$0xff] %v5965_v0  ;;  %918 = vst [vmem:[#allocation2 + $0xe0] sm:$0xff] %v5965_v0  ;;  %4758 = vmatprep.subr.bf16.mxu0 %v5636_v6  ;;  %v5662_v31 = vld [vmem:[#allocation8 + $0x70] sm:$0xff]   ;;  %v5663_v32 = vld [vmem:[#allocation8 + $0x78] sm:$0xff]  }
  0x98   : > { %919 = vst [vmem:[#allocation2 + $0xe8] sm:$0xff] %v5965_v0  ;;  %920 = vst [vmem:[#allocation2 + $0xf0] sm:$0xff] %v5965_v0  ;;  %v1059_v33 = vld [vmem:[#allocation2 + $0x1] sm:$0xff]  ;;  %v1060_v34 = vld [vmem:[#allocation2 + $0x9] sm:$0xff] }
  0x99   : > { %921 = vst [vmem:[#allocation2 + $0xf8] sm:$0xff] %v5965_v0  ;;  %922 = vst [vmem:[#allocation2 + $0x100] sm:$0xff] %v5965_v0  ;;  %v1091_v35 = vpack.c.bf16 %v1060_v34, %v1059_v33  ;;  %v6263_v36 = vld [vmem:[#allocation8 + $0xc0] sm:$0xff]   ;;  %v6267_v37 = vld [vmem:[#allocation8 + $0xc8] sm:$0xff]  }
  0x9a   : > { %923 = vst [vmem:[#allocation2 + $0x108] sm:$0xff] %v5965_v0  ;;  %924 = vst [vmem:[#allocation2 + $0x110] sm:$0xff] %v5965_v0  ;;  %4759 = vmatpush3.bf16.msra.mxu0 %v5636_v6  ;;  %5278 = vmatprep.subr.bf16.mxu1 %v6263_v36  ;;  %v6271_v38 = vld [vmem:[#allocation8 + $0xd0] sm:$0xff]   ;;  %v6275_v39 = vld [vmem:[#allocation8 + $0xd8] sm:$0xff]  }
  0x9b   : > { %925 = vst [vmem:[#allocation2 + $0x118] sm:$0xff] %v5965_v0  ;;  %926 = vst [vmem:[#allocation2 + $0x120] sm:$0xff] %v5965_v0  ;;  %4760 = vmatprep.subr.bf16.mxu0 %v5637_v7  ;;  %5286 = vmatpush3.bf16.msra.mxu1 %v6263_v36  ;;  %v6279_v40 = vld [vmem:[#allocation8 + $0xe0] sm:$0xff]   ;;  %v6283_v41 = vld [vmem:[#allocation8 + $0xe8] sm:$0xff]  }
  0x9c   : > { %927 = vst [vmem:[#allocation2 + $0x128] sm:$0xff] %v5965_v0  ;;  %928 = vst [vmem:[#allocation2 + $0x130] sm:$0xff] %v5965_v0  ;;  %5279 = vmatprep.subr.bf16.mxu1 %v6267_v37  ;;  %v5672_v42 = vld [vmem:[#allocation8] sm:$0xff]   ;;  %v6287_v43 = vld [vmem:[#allocation8 + $0xf0] sm:$0xff]  }
  0x9d   : > { %929 = vst [vmem:[#allocation2 + $0x138] sm:$0xff] %v5965_v0  ;;  %930 = vst [vmem:[#allocation2 + $0x140] sm:$0xff] %v5965_v0  ;;  %v6291_v44 = vld [vmem:[#allocation8 + $0xf8] sm:$0xff]   ;;  %v6295_v45 = vld [vmem:[#allocation8 + $0x100] sm:$0xff]  }
  0x9e   : > { %931 = vst [vmem:[#allocation2 + $0x148] sm:$0xff] %v5965_v0  ;;  %932 = vst [vmem:[#allocation2 + $0x150] sm:$0xff] %v5965_v0  ;;  %4761 = vmatpush3.bf16.msra.mxu0 %v5637_v7  ;;  %v6301_v46 = vld [vmem:[%s6922_s2] ss:$0 sm:$0xff]  ;;  %v5674_v7 = vld [vmem:[#allocation8 + $0x8] sm:$0xff]  }
  0x9f   : > { %933 = vst [vmem:[#allocation2 + $0x158] sm:$0xff] %v5965_v0  ;;  %934 = vst [vmem:[#allocation2 + $0x160] sm:$0xff] %v5965_v0  ;;  %4762 = vmatprep.subr.bf16.mxu0 %v5638_v8  ;;  %5287 = vmatpush3.bf16.msra.mxu1 %v6267_v37  ;;  %v6306_v47 = vld [vmem:[%s6923_s3] ss:$0 sm:$0xff] }
  0xa0   : > { %935 = vst [vmem:[#allocation2 + $0x168] sm:$0xff] %v5965_v0  ;;  %936 = vst [vmem:[#allocation2 + $0x170] sm:$0xff] %v5965_v0  ;;  %5280 = vmatprep.subr.bf16.mxu1 %v6271_v38 }
  0xa1   : > { %937 = vst [vmem:[#allocation2 + $0x178] sm:$0xff] %v5965_v0  ;;  %938 = vst [vmem:[#allocation2 + $0x180] sm:$0xff] %v5965_v0 }
  0xa2   : > { %939 = vst [vmem:[#allocation2 + $0x188] sm:$0xff] %v5965_v0  ;;  %940 = vst [vmem:[#allocation2 + $0x190] sm:$0xff] %v5965_v0  ;;  %4763 = vmatpush3.bf16.msra.mxu0 %v5638_v8 }
  0xa3   : > { %941 = vst [vmem:[#allocation2 + $0x198] sm:$0xff] %v5965_v0  ;;  %942 = vst [vmem:[#allocation2 + $0x1a0] sm:$0xff] %v5965_v0  ;;  %4764 = vmatprep.subr.bf16.mxu0 %v5639_v9  ;;  %5288 = vmatpush3.bf16.msra.mxu1 %v6271_v38 }
  0xa4   : > { %943 = vst [vmem:[#allocation2 + $0x1a8] sm:$0xff] %v5965_v0  ;;  %5281 = vmatprep.subr.bf16.mxu1 %v6275_v39 }
  0xa6   : > { %4765 = vmatpush3.bf16.msra.mxu0 %v5639_v9 }
  0xa7   : > { %4798 = vmatprep.subr.bf16.mxu0 %v5656_v12  ;;  %5289 = vmatpush3.bf16.msra.mxu1 %v6275_v39 }
  0xa8   : > { %5282 = vmatprep.subr.bf16.mxu1 %v6279_v40 }
  0xa9   : > { %4767 = vmatmul.mubr.bf16.vlgmr.msra.gmra.mrb[0].mxu0 %v431_v10 }
  0xaa   : > { %4770 = vmatprep.mubr.bf16.mxu0 %v433_v11  ;;  %4799 = vmatpush3.bf16.msra.mxu0 %v5656_v12 }
  0xab   : > { %4800 = vmatprep.subr.bf16.mxu0 %v5657_v13  ;;  %5290 = vmatpush3.bf16.msra.mxu1 %v6279_v40 }
  0xac   : > { %5283 = vmatprep.subr.bf16.mxu1 %v6283_v41 }
  0xae   : > { %4801 = vmatpush3.bf16.msra.mxu0 %v5657_v13 }
  0xaf   : > { %4802 = vmatprep.subr.bf16.mxu0 %v5658_v16  ;;  %5291 = vmatpush3.bf16.msra.mxu1 %v6283_v41 }
  0xb0   : > { %5284 = vmatprep.subr.bf16.mxu1 %v6287_v43 }
  0xb1   : > { %4771 = vmatmul.mubr.bf16.gmra.mrb[4].mxu0 %v435_v14 }
  0xb2   : > { %4774 = vmatprep.mubr.bf16.mxu0 %v437_v15  ;;  %4803 = vmatpush3.bf16.msra.mxu0 %v5658_v16 }
  0xb3   : > { %4804 = vmatprep.subr.bf16.mxu0 %v5659_v28  ;;  %5292 = vmatpush3.bf16.msra.mxu1 %v6287_v43 }
  0xb4   : > { %5285 = vmatprep.subr.bf16.mxu1 %v6291_v44 }
  0xb6   : > { %4805 = vmatpush3.bf16.msra.mxu0 %v5659_v28 }
  0xb7   : > { %4806 = vmatprep.subr.bf16.mxu0 %v5660_v29  ;;  %5293 = vmatpush3.bf16.msra.mxu1 %v6291_v44 }
  0xb8   : > { %4990 = vmatprep.subr.bf16.mxu1 %v6295_v45 }
  0xb9   : > { %4775 = vmatmul.mubr.bf16.gmra.mrb[8].mxu0 %v439_v17  ;;  %v5676_v17 = vld [vmem:[#allocation8 + $0x10] sm:$0xff]  }
  0xba   : > { %4778 = vmatprep.mubr.bf16.mxu0 %v441_v18  ;;  %4807 = vmatpush3.bf16.msra.mxu0 %v5660_v29 }
  0xbb   : > { %4808 = vmatprep.subr.bf16.mxu0 %v5661_v30 }
  0xbe   : > { %4809 = vmatpush3.bf16.msra.mxu0 %v5661_v30 }
  0xbf   : > { %4810 = vmatprep.subr.bf16.mxu0 %v5662_v31 }
  0xc1   : > { %4779 = vmatmul.mubr.bf16.gmra.mrb[12].mxu0 %v443_v19 }
  0xc2   : > { %4782 = vmatprep.mubr.bf16.mxu0 %v445_v20  ;;  %4811 = vmatpush3.bf16.msra.mxu0 %v5662_v31 }
  0xc3   : > { %4812 = vmatprep.subr.bf16.mxu0 %v5663_v32 }
  0xc6   : > { %4813 = vmatpush3.bf16.msra.mxu0 %v5663_v32 }
  0xc7   : > { %4846 = vmatprep.subr.bf16.mxu0 %v5672_v42 }
  0xc9   : > { %4783 = vmatmul.mubr.bf16.gmra.mrb[16].mxu0 %v447_v21 }
  0xca   : > { %4786 = vmatprep.mubr.bf16.mxu0 %v449_v22 }
  0xd1   : > { %4787 = vmatmul.mubr.bf16.gmra.mrb[20].mxu0 %v451_v23 }
  0xd2   : > { %4790 = vmatprep.mubr.bf16.mxu0 %v453_v24 }
  0xd9   : > { %4791 = vmatmul.mubr.bf16.gmra.mrb[24].mxu0 %v455_v25 }
  0xda   : > { %4794 = vmatprep.mubr.bf16.mxu0 %v457_v26 }
  0xe1   : > { %4795 = vmatmul.mubr.bf16.gmra.mrb[28].mxu0 %v459_v27  ;;  %v5678_v27 = vld [vmem:[#allocation8 + $0x18] sm:$0xff]  }
  0xe2   : > { %4814 = vmatprep.mubr.bf16.mxu0 %v1091_v35 }
 0x17c   : > { %v4768_v48 = vpop.f32.mrb[0].mxu0 }
 0x17d   : > { %v790_v49 = vmul.f32 %v4768_v48, %v6301_v46  ;;  %v655_v50 = vpop.f32.mrb[1].mxu0  ;;  %v5680_v48 = vld [vmem:[#allocation8 + $0x20] sm:$0xff]  }
 0x17e   : > { %v788_v51 = vmul.f32 %v6301_v46, %v655_v50  ;;  %v4769_v52 = vpop.f32.mrb[2].mxu0 }
 0x17f   : > { %v828_v53 = vadd.f32 %v6306_v47, %v790_v49  ;;  %v791_v54 = vmul.f32 %v4769_v52, %v6301_v46  ;;  %v658_v55 = vpop.f32.mrb[3].mxu0 }
 0x180   : > { %v826_v56 = vadd.f32 %v6306_v47, %v788_v51  ;;  %v789_v57 = vmul.f32 %v6301_v46, %v658_v55 }
 0x181   : > { %v860_v58 = vmax.f32 %v828_v53, 0.0  ;;  %v829_v59 = vadd.f32 %v6306_v47, %v791_v54 }
 0x182   : > { %v858_v60 = vmax.f32 %v826_v56, 0.0  ;;  %v827_v61 = vadd.f32 %v6306_v47, %v789_v57 }
 0x183   : > { %965 = vst [vmem:[#allocation2 + $0x31] sm:$0xff] %v860_v58  ;;  %v861_v62 = vmax.f32 %v829_v59, 0.0 }
 0x184   : > { %963 = vst [vmem:[#allocation2 + $0x19] sm:$0xff] %v858_v60  ;;  %v859_v63 = vmax.f32 %v827_v61, 0.0  ;;  %v4772_v0 = vpop.f32.mrb[4].mxu0 }
 0x185   : > { %966 = vst [vmem:[#allocation2 + $0x39] sm:$0xff] %v861_v62  ;;  %v794_v1 = vmul.f32 %v4772_v0, %v6301_v46  ;;  %v671_v2 = vpop.f32.mrb[5].mxu0  ;;  %v6317_v3 = vpack.c.bf16 %v861_v62, %v860_v58  ;;  %v5682_v58 = vld [vmem:[#allocation8 + $0x28] sm:$0xff]  }
 0x186   : > { %964 = vst [vmem:[#allocation2 + $0x21] sm:$0xff] %v859_v63  ;;  %v792_v4 = vmul.f32 %v6301_v46, %v671_v2  ;;  %v4773_v5 = vpop.f32.mrb[6].mxu0  ;;  %v6320_v6 = vpack.c.bf16 %v859_v63, %v858_v60 }
 0x187   : > { %v832_v8 = vadd.f32 %v6306_v47, %v794_v1  ;;  %v795_v9 = vmul.f32 %v4773_v5, %v6301_v46  ;;  %v674_v10 = vpop.f32.mrb[7].mxu0  ;;  %v5684_v5 = vld [vmem:[#allocation8 + $0x30] sm:$0xff]  }
 0x188   : > { %v830_v11 = vadd.f32 %v6306_v47, %v792_v4  ;;  %v793_v12 = vmul.f32 %v6301_v46, %v674_v10  ;;  %4815 = vmatmul.mubr.bf16.vlgmr.msra.gmra.mrb[32].mxu0 %v6320_v6 }
 0x189   : > { %v864_v13 = vmax.f32 %v832_v8, 0.0  ;;  %v833_v14 = vadd.f32 %v6306_v47, %v795_v9  ;;  %4818 = vmatprep.mubr.bf16.mxu0 %v6317_v3  ;;  %4847 = vmatpush3.bf16.msra.mxu0 %v5672_v42 }
 0x18a   : > { %v862_v15 = vmax.f32 %v830_v11, 0.0  ;;  %v831_v16 = vadd.f32 %v6306_v47, %v793_v12  ;;  %4848 = vmatprep.subr.bf16.mxu0 %v5674_v7 }
 0x18b   : > { %969 = vst [vmem:[#allocation2 + $0x61] sm:$0xff] %v864_v13  ;;  %v865_v18 = vmax.f32 %v833_v14, 0.0 }
 0x18c   : > { %967 = vst [vmem:[#allocation2 + $0x49] sm:$0xff] %v862_v15  ;;  %v863_v19 = vmax.f32 %v831_v16, 0.0  ;;  %v4776_v20 = vpop.f32.mrb[8].mxu0  ;;  %v5686_v16 = vld [vmem:[#allocation8 + $0x38] sm:$0xff]  }
 0x18d   : > { %970 = vst [vmem:[#allocation2 + $0x69] sm:$0xff] %v865_v18  ;;  %v798_v21 = vmul.f32 %v4776_v20, %v6301_v46  ;;  %v687_v22 = vpop.f32.mrb[9].mxu0  ;;  %v6331_v23 = vpack.c.bf16 %v865_v18, %v864_v13  ;;  %4849 = vmatpush3.bf16.msra.mxu0 %v5674_v7 }
 0x18e   : > { %968 = vst [vmem:[#allocation2 + $0x51] sm:$0xff] %v863_v19  ;;  %v796_v24 = vmul.f32 %v6301_v46, %v687_v22  ;;  %v4777_v25 = vpop.f32.mrb[10].mxu0  ;;  %v6334_v26 = vpack.c.bf16 %v863_v19, %v862_v15  ;;  %4850 = vmatprep.subr.bf16.mxu0 %v5676_v17 }
 0x18f   : > { %v836_v28 = vadd.f32 %v6306_v47, %v798_v21  ;;  %v799_v29 = vmul.f32 %v4777_v25, %v6301_v46  ;;  %v690_v30 = vpop.f32.mrb[11].mxu0 }
 0x190   : > { %v834_v31 = vadd.f32 %v6306_v47, %v796_v24  ;;  %v797_v32 = vmul.f32 %v6301_v46, %v690_v30  ;;  %4819 = vmatmul.mubr.bf16.gmra.mrb[36].mxu0 %v6334_v26 }
 0x191   : > { %v868_v33 = vmax.f32 %v836_v28, 0.0  ;;  %v837_v34 = vadd.f32 %v6306_v47, %v799_v29  ;;  %4822 = vmatprep.mubr.bf16.mxu0 %v6331_v23  ;;  %4851 = vmatpush3.bf16.msra.mxu0 %v5676_v17  ;;  %v6372_v28 = vld [vmem:[#allocation8 + $0x80] sm:$0xff]  }
 0x192   : > { %v866_v35 = vmax.f32 %v834_v31, 0.0  ;;  %v835_v42 = vadd.f32 %v6306_v47, %v797_v32  ;;  %4852 = vmatprep.subr.bf16.mxu0 %v5678_v27 }
 0x193   : > { %973 = vst [vmem:[#allocation2 + $0x91] sm:$0xff] %v868_v33  ;;  %v869_v49 = vmax.f32 %v837_v34, 0.0 }
 0x194   : > { %971 = vst [vmem:[#allocation2 + $0x79] sm:$0xff] %v866_v35  ;;  %v867_v50 = vmax.f32 %v835_v42, 0.0  ;;  %v4780_v51 = vpop.f32.mrb[12].mxu0 }
 0x195   : > { %974 = vst [vmem:[#allocation2 + $0x99] sm:$0xff] %v869_v49  ;;  %v802_v52 = vmul.f32 %v4780_v51, %v6301_v46  ;;  %v703_v53 = vpop.f32.mrb[13].mxu0  ;;  %v6345_v54 = vpack.c.bf16 %v869_v49, %v868_v33  ;;  %4853 = vmatpush3.bf16.msra.mxu0 %v5678_v27 }
 0x196   : > { %972 = vst [vmem:[#allocation2 + $0x81] sm:$0xff] %v867_v50  ;;  %v800_v55 = vmul.f32 %v6301_v46, %v703_v53  ;;  %v4781_v56 = vpop.f32.mrb[14].mxu0  ;;  %v6348_v57 = vpack.c.bf16 %v867_v50, %v866_v35  ;;  %4854 = vmatprep.subr.bf16.mxu0 %v5680_v48 }
 0x197   : > { %v840_v59 = vadd.f32 %v6306_v47, %v802_v52  ;;  %v803_v60 = vmul.f32 %v4781_v56, %v6301_v46  ;;  %v706_v61 = vpop.f32.mrb[15].mxu0 }
 0x198   : > { %v838_v62 = vadd.f32 %v6306_v47, %v800_v55  ;;  %v801_v63 = vmul.f32 %v6301_v46, %v706_v61  ;;  %4823 = vmatmul.mubr.bf16.gmra.mrb[40].mxu0 %v6348_v57 }
 0x199   : > { %v872_v0 = vmax.f32 %v840_v59, 0.0  ;;  %v841_v1 = vadd.f32 %v6306_v47, %v803_v60  ;;  %4826 = vmatprep.mubr.bf16.mxu0 %v6345_v54  ;;  %4855 = vmatpush3.bf16.msra.mxu0 %v5680_v48 }
 0x19a   : > { %v870_v2 = vmax.f32 %v838_v62, 0.0  ;;  %v839_v4 = vadd.f32 %v6306_v47, %v801_v63  ;;  %4856 = vmatprep.subr.bf16.mxu0 %v5682_v58 }
 0x19b   : > { %977 = vst [vmem:[#allocation2 + $0xc1] sm:$0xff] %v872_v0  ;;  %v873_v7 = vmax.f32 %v841_v1, 0.0 }
 0x19c   : > { %975 = vst [vmem:[#allocation2 + $0xa9] sm:$0xff] %v870_v2  ;;  %v871_v8 = vmax.f32 %v839_v4, 0.0  ;;  %v4784_v9 = vpop.f32.mrb[16].mxu0 }
 0x19d   : > { %978 = vst [vmem:[#allocation2 + $0xc9] sm:$0xff] %v873_v7  ;;  %v806_v10 = vmul.f32 %v4784_v9, %v6301_v46  ;;  %v719_v11 = vpop.f32.mrb[17].mxu0  ;;  %v6359_v12 = vpack.c.bf16 %v873_v7, %v872_v0  ;;  %4857 = vmatpush3.bf16.msra.mxu0 %v5682_v58 }
 0x19e   : > { %976 = vst [vmem:[#allocation2 + $0xb1] sm:$0xff] %v871_v8  ;;  %v804_v13 = vmul.f32 %v6301_v46, %v719_v11  ;;  %v4785_v14 = vpop.f32.mrb[18].mxu0  ;;  %v6362_v15 = vpack.c.bf16 %v871_v8, %v870_v2  ;;  %4858 = vmatprep.subr.bf16.mxu0 %v5684_v5 }
 0x19f   : > { %v844_v17 = vadd.f32 %v6306_v47, %v806_v10  ;;  %v807_v18 = vmul.f32 %v4785_v14, %v6301_v46  ;;  %v722_v19 = vpop.f32.mrb[19].mxu0 }
 0x1a0   : > { %v842_v20 = vadd.f32 %v6306_v47, %v804_v13  ;;  %v805_v21 = vmul.f32 %v6301_v46, %v722_v19  ;;  %4827 = vmatmul.mubr.bf16.gmra.mrb[44].mxu0 %v6362_v15 }
 0x1a1   : > { %v876_v22 = vmax.f32 %v844_v17, 0.0  ;;  %v845_v24 = vadd.f32 %v6306_v47, %v807_v18  ;;  %4830 = vmatprep.mubr.bf16.mxu0 %v6359_v12  ;;  %4859 = vmatpush3.bf16.msra.mxu0 %v5684_v5  ;;  %v5675_v18 = vld [vmem:[#allocation8 + $0x108] sm:$0xff]  }
 0x1a2   : > { %v874_v25 = vmax.f32 %v842_v20, 0.0  ;;  %v843_v27 = vadd.f32 %v6306_v47, %v805_v21  ;;  %4860 = vmatprep.subr.bf16.mxu0 %v5686_v16 }
 0x1a3   : > { %981 = vst [vmem:[#allocation2 + $0xf1] sm:$0xff] %v876_v22  ;;  %v877_v29 = vmax.f32 %v845_v24, 0.0 }
 0x1a4   : > { %979 = vst [vmem:[#allocation2 + $0xd9] sm:$0xff] %v874_v25  ;;  %v875_v30 = vmax.f32 %v843_v27, 0.0  ;;  %v4788_v31 = vpop.f32.mrb[20].mxu0 }
 0x1a5   : > { %982 = vst [vmem:[#allocation2 + $0xf9] sm:$0xff] %v877_v29  ;;  %v810_v32 = vmul.f32 %v4788_v31, %v6301_v46  ;;  %v735_v33 = vpop.f32.mrb[21].mxu0  ;;  %v6375_v34 = vpack.c.bf16 %v877_v29, %v876_v22  ;;  %4861 = vmatpush3.bf16.msra.mxu0 %v5686_v16  ;;  %v5677_v29 = vld [vmem:[#allocation8 + $0x110] sm:$0xff]  }
 0x1a6   : > { %980 = vst [vmem:[#allocation2 + $0xe1] sm:$0xff] %v875_v30  ;;  %v808_v35 = vmul.f32 %v6301_v46, %v735_v33  ;;  %v4789_v42 = vpop.f32.mrb[22].mxu0  ;;  %v6378_v48 = vpack.c.bf16 %v875_v30, %v874_v25  ;;  %4894 = vmatprep.subr.bf16.mxu0 %v6372_v28 }
 0x1a7   : > { %v848_v49 = vadd.f32 %v6306_v47, %v810_v32  ;;  %v811_v50 = vmul.f32 %v4789_v42, %v6301_v46  ;;  %v738_v51 = vpop.f32.mrb[23].mxu0 }
 0x1a8   : > { %v846_v52 = vadd.f32 %v6306_v47, %v808_v35  ;;  %v809_v53 = vmul.f32 %v6301_v46, %v738_v51  ;;  %4831 = vmatmul.mubr.bf16.gmra.mrb[48].mxu0 %v6378_v48 }
 0x1a9   : > { %v880_v55 = vmax.f32 %v848_v49, 0.0  ;;  %v849_v56 = vadd.f32 %v6306_v47, %v811_v50  ;;  %4834 = vmatprep.mubr.bf16.mxu0 %v6375_v34 }
 0x1aa   : > { %v878_v58 = vmax.f32 %v846_v52, 0.0  ;;  %v847_v59 = vadd.f32 %v6306_v47, %v809_v53  ;;  %v1866_v10 = vld [vmem:[#allocation2 + $0xf0] sm:$0xff] }
 0x1ab   : > { %985 = vst [vmem:[#allocation2 + $0x121] sm:$0xff] %v880_v55  ;;  %v881_v60 = vmax.f32 %v849_v56, 0.0  ;;  %v1864_v2 = vld [vmem:[#allocation2 + $0xd8] sm:$0xff] }
 0x1ac   : > { %983 = vst [vmem:[#allocation2 + $0x109] sm:$0xff] %v878_v58  ;;  %v879_v61 = vmax.f32 %v847_v59, 0.0  ;;  %v4792_v62 = vpop.f32.mrb[24].mxu0  ;;  %v1867_v63 = vld [vmem:[#allocation2 + $0xf8] sm:$0xff] }
 0x1ad   : > { %986 = vst [vmem:[#allocation2 + $0x129] sm:$0xff] %v881_v60  ;;  %v814_v0 = vmul.f32 %v4792_v62, %v6301_v46  ;;  %v751_v1 = vpop.f32.mrb[25].mxu0  ;;  %v1865_v4 = vld [vmem:[#allocation2 + $0xe0] sm:$0xff]  ;;  %v6390_v5 = vpack.c.bf16 %v881_v60, %v880_v55  ;;  %v6399_v17 = vpack.c.bf16 %v1867_v63, %v1866_v10 }
 0x1ae   : > { %984 = vst [vmem:[#allocation2 + $0x111] sm:$0xff] %v879_v61  ;;  %v812_v7 = vmul.f32 %v6301_v46, %v751_v1  ;;  %v4793_v8 = vpop.f32.mrb[26].mxu0  ;;  %v6393_v9 = vpack.c.bf16 %v1865_v4, %v1864_v2  ;;  %v6395_v11 = vpack.c.bf16 %v879_v61, %v878_v58  ;;  %v5679_v61 = vld [vmem:[#allocation8 + $0x118] sm:$0xff]  }
 0x1af   : > { %v852_v13 = vadd.f32 %v6306_v47, %v814_v0  ;;  %v815_v14 = vmul.f32 %v4793_v8, %v6301_v46  ;;  %v754_v16 = vpop.f32.mrb[27].mxu0  ;;  %v5681_v8 = vld [vmem:[#allocation8 + $0x120] sm:$0xff]  }
 0x1b0   : > { %v850_v19 = vadd.f32 %v6306_v47, %v812_v7  ;;  %v813_v20 = vmul.f32 %v6301_v46, %v754_v16  ;;  %4974 = vmatprep.mubr.bf16.mxu1 %v6393_v9  ;;  %4835 = vmatmul.mubr.bf16.gmra.mrb[52].mxu0 %v6395_v11  ;;  %v5752_v16 = vld [vmem:[#allocation2 + $0x1b0] sm:$0xff] }
 0x1b1   : > { %v884_v21 = vmax.f32 %v852_v13, 0.0  ;;  %v853_v22 = vadd.f32 %v6306_v47, %v815_v14  ;;  %4975 = vmatmul.mubr.bf16.vlgmr.msra.gmra.mrb[0].mxu1 %v6399_v17  ;;  %4838 = vmatprep.mubr.bf16.mxu0 %v6390_v5 }
 0x1b2   : > { %v882_v24 = vmax.f32 %v850_v19, 0.0  ;;  %v851_v25 = vadd.f32 %v6306_v47, %v813_v20  ;;  %4991 = vmatpush3.bf16.msra.mxu1 %v6295_v45  ;;  %v1870_v53 = vld [vmem:[#allocation2 + $0x120] sm:$0xff] }
 0x1b3   : > { %989 = vst [vmem:[#allocation2 + $0x151] sm:$0xff] %v884_v21  ;;  %v885_v27 = vmax.f32 %v853_v22, 0.0  ;;  %4992 = vmatprep.subr.bf16.mxu1 %v5675_v18  ;;  %v1868_v42 = vld [vmem:[#allocation2 + $0x108] sm:$0xff] }
 0x1b4   : > { %987 = vst [vmem:[#allocation2 + $0x139] sm:$0xff] %v882_v24  ;;  %v883_v30 = vmax.f32 %v851_v25, 0.0  ;;  %v4796_v31 = vpop.f32.mrb[28].mxu0  ;;  %v1871_v32 = vld [vmem:[#allocation2 + $0x128] sm:$0xff]  ;;  %v5685_v25 = vld [vmem:[#allocation8 + $0x130] sm:$0xff]  }
 0x1b5   : > { %990 = vst [vmem:[#allocation2 + $0x159] sm:$0xff] %v885_v27  ;;  %v818_v33 = vmul.f32 %v4796_v31, %v6301_v46  ;;  %v767_v35 = vpop.f32.mrb[29].mxu0  ;;  %v1869_v49 = vld [vmem:[#allocation2 + $0x110] sm:$0xff]  ;;  %v6411_v50 = vpack.c.bf16 %v885_v27, %v884_v21  ;;  %v6420_v60 = vpack.c.bf16 %v1871_v32, %v1870_v53  ;;  %v998_v27 = vld [vmem:[#allocation2 + $0x20] sm:$0xff]  ;;  %v5687_v53 = vld [vmem:[#allocation8 + $0x138] sm:$0xff]  }
 0x1b6   : > { %988 = vst [vmem:[#allocation2 + $0x141] sm:$0xff] %v883_v30  ;;  %v816_v51 = vmul.f32 %v6301_v46, %v767_v35  ;;  %4993 = vmatpush3.bf16.msra.mxu1 %v5675_v18  ;;  %v4797_v45 = vpop.f32.mrb[30].mxu0  ;;  %v6414_v52 = vpack.c.bf16 %v1869_v49, %v1868_v42  ;;  %v6416_v55 = vpack.c.bf16 %v883_v30, %v882_v24  ;;  %v5683_v24 = vld [vmem:[#allocation8 + $0x128] sm:$0xff]   ;;  %v1000_v30 = vld [vmem:[#allocation2 + $0x38] sm:$0xff] }
 0x1b7   : > { %v856_v56 = vadd.f32 %v6306_v47, %v818_v33  ;;  %v819_v58 = vmul.f32 %v4797_v45, %v6301_v46  ;;  %v770_v59 = vpop.f32.mrb[31].mxu0  ;;  %4994 = vmatprep.subr.bf16.mxu1 %v5677_v29  ;;  %v6430_v18 = vpack.c.bf16 %v5752_v16, %v5752_v16  ;;  %v997_v33 = vld [vmem:[#allocation2 + $0x18] sm:$0xff]  ;;  %v1007_v16 = vld [vmem:[#allocation2 + $0x90] sm:$0xff] }
 0x1b8   : > { %v854_v62 = vadd.f32 %v6306_v47, %v816_v51  ;;  %v817_v63 = vmul.f32 %v6301_v46, %v770_v59  ;;  %4978 = vmatprep.mubr.bf16.mxu1 %v6414_v52  ;;  %4839 = vmatmul.mubr.bf16.gmra.mrb[56].mxu0 %v6416_v55  ;;  %v6446_v49 = vpack.c.bf16 %v998_v27, %v997_v33  ;;  %v999_v51 = vld [vmem:[#allocation2 + $0x30] sm:$0xff]  ;;  %v5688_v59 = vld [vmem:[#allocation8 + $0x140] sm:$0xff]   ;;  %v1012_v27 = vld [vmem:[#allocation2 + $0xc8] sm:$0xff] }
 0x1b9   : > { %v888_v0 = vmax.f32 %v856_v56, 0.0  ;;  %v857_v1 = vadd.f32 %v6306_v47, %v819_v58  ;;  %4979 = vmatmul.mubr.bf16.gmra.mrb[4].mxu1 %v6420_v60  ;;  %4842 = vmatprep.mubr.bf16.mxu0 %v6411_v50  ;;  %v6448_v56 = vpack.c.bf16 %v1000_v30, %v999_v51  ;;  %v5694_v58 = vld [vmem:[#allocation8 + $0x88] sm:$0xff]   ;;  %v5702_v51 = vld [vmem:[#allocation8 + $0x178] sm:$0xff]  }
 0x1ba   : > { %v886_v2 = vmax.f32 %v854_v62, 0.0  ;;  %v855_v4 = vadd.f32 %v6306_v47, %v817_v63  ;;  %4995 = vmatpush3.bf16.msra.mxu1 %v5677_v29  ;;  %v1874_v47 = vld [vmem:[#allocation2 + $0x150] sm:$0xff]  ;;  %v1004_v62 = vld [vmem:[#allocation2 + $0x68] sm:$0xff] }
 0x1bb   : > { %993 = vst [vmem:[#allocation2 + $0x181] sm:$0xff] %v888_v0  ;;  %v889_v7 = vmax.f32 %v857_v1, 0.0  ;;  %4996 = vmatprep.subr.bf16.mxu1 %v5679_v61  ;;  %v1872_v13 = vld [vmem:[#allocation2 + $0x138] sm:$0xff]  ;;  %v5695_v63 = vld [vmem:[#allocation8 + $0x90] sm:$0xff]   ;;  %v1009_v30 = vld [vmem:[#allocation2 + $0xa8] sm:$0xff] }
 0x1bc   : > { %991 = vst [vmem:[#allocation2 + $0x169] sm:$0xff] %v886_v2  ;;  %v887_v46 = vmax.f32 %v855_v4, 0.0  ;;  %v1875_v10 = vld [vmem:[#allocation2 + $0x158] sm:$0xff]  ;;  %v5689_v4 = vld [vmem:[#allocation8 + $0x148] sm:$0xff]  }
 0x1bd   : > { %994 = vst [vmem:[#allocation2 + $0x189] sm:$0xff] %v889_v7  ;;  %v1873_v14 = vld [vmem:[#allocation2 + $0x140] sm:$0xff]  ;;  %v6432_v19 = vpack.c.bf16 %v889_v7, %v888_v0  ;;  %v6438_v22 = vpack.c.bf16 %v1875_v10, %v1874_v47  ;;  %v1001_v0 = vld [vmem:[#allocation2 + $0x48] sm:$0xff] }
 0x1be   : > { %992 = vst [vmem:[#allocation2 + $0x171] sm:$0xff] %v887_v46  ;;  %4997 = vmatpush3.bf16.msra.mxu1 %v5679_v61  ;;  %v6434_v20 = vpack.c.bf16 %v1873_v14, %v1872_v13  ;;  %v6436_v21 = vpack.c.bf16 %v887_v46, %v886_v2  ;;  %v1002_v61 = vld [vmem:[#allocation2 + $0x50] sm:$0xff]  ;;  %v1003_v2 = vld [vmem:[#allocation2 + $0x60] sm:$0xff]  ;;  %v1008_v46 = vld [vmem:[#allocation2 + $0x98] sm:$0xff] }
 0x1bf   : > { %4998 = vmatprep.subr.bf16.mxu1 %v5681_v8  ;;  %v6455_v1 = vpack.c.bf16 %v1002_v61, %v1001_v0  ;;  %v6457_v7 = vpack.c.bf16 %v1004_v62, %v1003_v2  ;;  %v5698_v10 = vld [vmem:[#allocation8 + $0xa0] sm:$0xff]   ;;  %v1005_v13 = vld [vmem:[#allocation2 + $0x78] sm:$0xff]  ;;  %v6465_v47 = vpack.c.bf16 %v1008_v46, %v1007_v16  ;;  %v1559_v2 = vld [vmem:[#allocation2 + $0xca] sm:$0xff] }
 0x1c0   : > { %4982 = vmatprep.mubr.bf16.mxu1 %v6434_v20  ;;  %4843 = vmatmul.mubr.bf16.gmra.mrb[60].mxu0 %v6436_v21  ;;  %v5707_v61 = vld [vmem:[#allocation8 + $0x198] sm:$0xff]   ;;  %v1558_v0 = vld [vmem:[#allocation2 + $0xc2] sm:$0xff] }
 0x1c1   : > { %4983 = vmatmul.mubr.bf16.gmra.mrb[8].mxu1 %v6438_v22  ;;  %4862 = vmatprep.mubr.bf16.mxu0 %v6430_v18  ;;  %v2473_v62 = vld [vmem:[#allocation2 + $0xb2] sm:$0xff] }
 0x1c2   : > { %4999 = vmatpush3.bf16.msra.mxu1 %v5681_v8  ;;  %v1878_v42 = vld [vmem:[#allocation2 + $0x180] sm:$0xff]  ;;  %v5690_v8 = vld [vmem:[#allocation8 + $0x150] sm:$0xff]   ;;  %v5711_v16 = vld [vmem:[#allocation8 + $0x1b8] sm:$0xff]  }
 0x1c3   : > { %5000 = vmatprep.subr.bf16.mxu1 %v5683_v24  ;;  %v1876_v31 = vld [vmem:[#allocation2 + $0x168] sm:$0xff]  ;;  %v1562_v46 = vld [vmem:[#allocation2 + $0xf2] sm:$0xff] }
 0x1c4   : > { %v1879_v29 = vld [vmem:[#allocation2 + $0x188] sm:$0xff] }
 0x1c5   : > { %v1877_v32 = vld [vmem:[#allocation2 + $0x170] sm:$0xff]  ;;  %v1895_v45 = vpack.c.bf16 %v1879_v29, %v1878_v42 }
 0x1c6   : > { %5001 = vmatpush3.bf16.msra.mxu1 %v5683_v24  ;;  %v6444_v35 = vpack.c.bf16 %v1877_v32, %v1876_v31  ;;  %v1010_v24 = vld [vmem:[#allocation2 + $0xb0] sm:$0xff]  ;;  %v1011_v32 = vld [vmem:[#allocation2 + $0xc0] sm:$0xff] }
 0x1c7   : > { %5002 = vmatprep.subr.bf16.mxu1 %v5685_v25  ;;  %v5701_v29 = vld [vmem:[#allocation8 + $0xb0] sm:$0xff]   ;;  %v6471_v31 = vpack.c.bf16 %v1010_v24, %v1009_v30  ;;  %v6473_v33 = vpack.c.bf16 %v1012_v27, %v1011_v32  ;;  %v1566_v24 = vld [vmem:[#allocation2 + $0x122] sm:$0xff] }
 0x1c8   : > { %4986 = vmatprep.mubr.bf16.mxu1 %v6444_v35  ;;  %4863 = vmatmul.mubr.bf16.vlgmr.msra.gmra.mrb[32].mxu0 %v6446_v49  ;;  %v5699_v42 = vld [vmem:[#allocation8 + $0x170] sm:$0xff]   ;;  %v2485_v30 = vld [vmem:[#allocation2 + $0x142] sm:$0xff] }
 0x1c9   : > { %4987 = vmatmul.mubr.bf16.gmra.mrb[12].mxu1 %v1895_v45  ;;  %4866 = vmatprep.mubr.bf16.mxu0 %v6448_v56  ;;  %v5706_v45 = vld [vmem:[#allocation8 + $0x190] sm:$0xff]  }
 0x1ca   : > { %5003 = vmatpush3.bf16.msra.mxu1 %v5685_v25  ;;  %5006 = vmatprep.mubr.bf16.mxu1 %v6320_v6  ;;  %v5697_v6 = vld [vmem:[#allocation8 + $0x98] sm:$0xff]   ;;  %v5693_v25 = vld [vmem:[#allocation8 + $0x160] sm:$0xff]  }
 0x1cb   : > { %5004 = vmatprep.subr.bf16.mxu1 %v5687_v53  ;;  %4895 = vmatpush3.bf16.msra.mxu0 %v6372_v28  ;;  %v1006_v28 = vld [vmem:[#allocation2 + $0x80] sm:$0xff]  ;;  %v1570_v32 = vld [vmem:[#allocation2 + $0x152] sm:$0xff] }
 0x1cc   : > { %4896 = vmatprep.subr.bf16.mxu0 %v5694_v58  ;;  %v6463_v14 = vpack.c.bf16 %v1006_v28, %v1005_v13  ;;  %v2477_v28 = vld [vmem:[#allocation2 + $0xe2] sm:$0xff] }
 0x1ce   : > { %5005 = vmatpush3.bf16.msra.mxu1 %v5687_v53  ;;  %v1555_v53 = vld [vmem:[#allocation2 + $0x9a] sm:$0xff] }
 0x1cf   : > { %5038 = vmatprep.subr.bf16.mxu1 %v5688_v59  ;;  %4897 = vmatpush3.bf16.msra.mxu0 %v5694_v58 }
 0x1d0   : > { %4867 = vmatmul.mubr.bf16.gmra.mrb[36].mxu0 %v6455_v1  ;;  %4898 = vmatprep.subr.bf16.mxu0 %v5695_v63 }
 0x1d1   : > { %5007 = vmatmul.mubr.bf16.vlgmr.msra.gmra.mrb[16].mxu1 %v6317_v3  ;;  %4870 = vmatprep.mubr.bf16.mxu0 %v6457_v7  ;;  %v5691_v3 = vld [vmem:[#allocation8 + $0x158] sm:$0xff]  }
 0x1d2   : > { %5039 = vmatpush3.bf16.msra.mxu1 %v5688_v59  ;;  %5010 = vmatprep.mubr.bf16.mxu1 %v6334_v26  ;;  %v5700_v26 = vld [vmem:[#allocation8 + $0xa8] sm:$0xff]  }
 0x1d3   : > { %5040 = vmatprep.subr.bf16.mxu1 %v5689_v4  ;;  %4899 = vmatpush3.bf16.msra.mxu0 %v5695_v63  ;;  %v5708_v63 = vld [vmem:[#allocation8 + $0x1a0] sm:$0xff]  }
 0x1d4   : > { %4900 = vmatprep.subr.bf16.mxu0 %v5697_v6 }
 0x1d6   : > { %5041 = vmatpush3.bf16.msra.mxu1 %v5689_v4  ;;  %v6527_v4 = vpack.c.bf16 %v1559_v2, %v1558_v0  ;;  %v2794_v0 = vld [vmem:[#allocation2 + $0x170] sm:$0xff]  ;;  %v2796_v2 = vld [vmem:[#allocation2 + $0x188] sm:$0xff] }
 0x1d7   : > { %5042 = vmatprep.subr.bf16.mxu1 %v5690_v8  ;;  %4901 = vmatpush3.bf16.msra.mxu0 %v5697_v6  ;;  %v5709_v6 = vld [vmem:[#allocation8 + $0x1a8] sm:$0xff]  }
 0x1d8   : > { %4871 = vmatmul.mubr.bf16.gmra.mrb[40].mxu0 %v6463_v14  ;;  %4902 = vmatprep.subr.bf16.mxu0 %v5698_v10 }
 0x1d9   : > { %5011 = vmatmul.mubr.bf16.gmra.mrb[20].mxu1 %v6331_v23  ;;  %4874 = vmatprep.mubr.bf16.mxu0 %v6465_v47  ;;  %v5696_v23 = vld [vmem:[#allocation8 + $0x168] sm:$0xff]  }
 0x1da   : > { %5014 = vmatprep.mubr.bf16.mxu1 %v6348_v57  ;;  %5043 = vmatpush3.bf16.msra.mxu1 %v5690_v8  ;;  %v5703_v57 = vld [vmem:[#allocation8 + $0xb8] sm:$0xff]   ;;  %v5710_v8 = vld [vmem:[#allocation8 + $0x1b0] sm:$0xff]  }
 0x1db   : > { %5044 = vmatprep.subr.bf16.mxu1 %v5691_v3  ;;  %4903 = vmatpush3.bf16.msra.mxu0 %v5698_v10  ;;  %v1563_v10 = vld [vmem:[#allocation2 + $0xfa] sm:$0xff] }
 0x1dc   : > { %4904 = vmatprep.subr.bf16.mxu0 %v5700_v26  ;;  %v6539_v13 = vpack.c.bf16 %v1563_v10, %v1562_v46  ;;  %v3074_v46 = vld [vmem:[#allocation2 + $0x39] sm:$0xff]  ;;  %v3073_v10 = vld [vmem:[#allocation2 + $0x31] sm:$0xff] }
 0x1de   : > { %5045 = vmatpush3.bf16.msra.mxu1 %v5691_v3  ;;  %v2481_v3 = vld [vmem:[#allocation2 + $0x112] sm:$0xff] }
 0x1df   : > { %5046 = vmatprep.subr.bf16.mxu1 %v5693_v25  ;;  %4905 = vmatpush3.bf16.msra.mxu0 %v5700_v26  ;;  %v5712_v26 = vld [vmem:[#allocation8 + $0x1c0] sm:$0xff]  }
 0x1e0   : > { %4875 = vmatmul.mubr.bf16.gmra.mrb[44].mxu0 %v6471_v31  ;;  %4906 = vmatprep.subr.bf16.mxu0 %v5701_v29 }
 0x1e1   : > { %5015 = vmatmul.mubr.bf16.gmra.mrb[24].mxu1 %v6345_v54  ;;  %4878 = vmatprep.mubr.bf16.mxu0 %v6473_v33  ;;  %v5704_v54 = vld [vmem:[#allocation8 + $0x180] sm:$0xff]  }
 0x1e2   : > { %5018 = vmatprep.mubr.bf16.mxu1 %v6362_v15  ;;  %5047 = vmatpush3.bf16.msra.mxu1 %v5693_v25  ;;  %v1543_v15 = vld [vmem:[#allocation2 + $0xa] sm:$0xff] }
 0x1e3   : > { %5048 = vmatprep.subr.bf16.mxu1 %v5696_v23  ;;  %4907 = vmatpush3.bf16.msra.mxu0 %v5701_v29  ;;  %v1567_v25 = vld [vmem:[#allocation2 + $0x12a] sm:$0xff] }
 0x1e4   : > { %4908 = vmatprep.subr.bf16.mxu0 %v5703_v57  ;;  %v6548_v29 = vpack.c.bf16 %v1567_v25, %v1566_v24  ;;  %v3077_v25 = vld [vmem:[#allocation2 + $0x61] sm:$0xff] }
 0x1e6   : > { %5049 = vmatpush3.bf16.msra.mxu1 %v5696_v23  ;;  %v1571_v23 = vld [vmem:[#allocation2 + $0x15a] sm:$0xff] }
 0x1e7   : > { %5050 = vmatprep.subr.bf16.mxu1 %v5699_v42  ;;  %4909 = vmatpush3.bf16.msra.mxu0 %v5703_v57 }
 0x1e8   : > { %4879 = vmatmul.mubr.bf16.gmra.mrb[48].mxu0 %v6393_v9  ;;  %4942 = vmatprep.subr.bf16.mxu0 %v6263_v36  ;;  %v2461_v9 = vld [vmem:[#allocation2 + $0x22] sm:$0xff] }
 0x1e9   : > { %5019 = vmatmul.mubr.bf16.gmra.mrb[28].mxu1 %v6359_v12  ;;  %4882 = vmatprep.mubr.bf16.mxu0 %v6399_v17  ;;  %v1542_v12 = vld [vmem:[#allocation2 + $0x2] sm:$0xff]  ;;  %v1547_v17 = vld [vmem:[#allocation2 + $0x3a] sm:$0xff] }
 0x1ea   : > { %5022 = vmatprep.mubr.bf16.mxu1 %v6378_v48  ;;  %5051 = vmatpush3.bf16.msra.mxu1 %v5699_v42  ;;  %v1574_v48 = vpack.c.bf16 %v1543_v15, %v1542_v12  ;;  %v6556_v42 = vpack.c.bf16 %v1571_v23, %v1570_v32  ;;  %v2490_v15 = vld [vmem:[#allocation2 + $0x182] sm:$0xff]  ;;  %v5722_v32 = vld [vmem:[#allocation8 + $0x210] sm:$0xff]  }
 0x1eb   : > { %5052 = vmatprep.subr.bf16.mxu1 %v5702_v51  ;;  %v3080_v23 = vld [vmem:[#allocation2 + $0x81] sm:$0xff] }
 0x1ee   : > { %5053 = vmatpush3.bf16.msra.mxu1 %v5702_v51  ;;  %v2488_v51 = vld [vmem:[#allocation2 + $0x16a] sm:$0xff] }
 0x1ef   : > { %5086 = vmatprep.subr.bf16.mxu1 %v5704_v54 }
 0x1f0   : > { %4883 = vmatmul.mubr.bf16.gmra.mrb[52].mxu0 %v6414_v52 }
 0x1f1   : > { %5023 = vmatmul.mubr.bf16.gmra.mrb[0].mxu1 %v6375_v34  ;;  %4886 = vmatprep.mubr.bf16.mxu0 %v6420_v60  ;;  %v2460_v34 = vld [vmem:[#allocation2 + $0x1a] sm:$0xff]  ;;  %v1550_v60 = vld [vmem:[#allocation2 + $0x62] sm:$0xff] }
 0x1f2   : > { %5026 = vmatprep.mubr.bf16.mxu1 %v6395_v11  ;;  %v1546_v11 = vld [vmem:[#allocation2 + $0x32] sm:$0xff]  ;;  %v2492_v52 = vpack.c.bf16 %v2461_v9, %v2460_v34  ;;  %v5713_v9 = vld [vmem:[#allocation8 + $0x1c8] sm:$0xff]  }
 0x1f8   : > { %4887 = vmatmul.mubr.bf16.gmra.mrb[56].mxu0 %v6434_v20  ;;  %v1551_v20 = vld [vmem:[#allocation2 + $0x6a] sm:$0xff] }
 0x1f9   : > { %5027 = vmatmul.mubr.bf16.gmra.mrb[4].mxu1 %v6390_v5  ;;  %4890 = vmatprep.mubr.bf16.mxu0 %v6438_v22  ;;  %v6495_v5 = vpack.c.bf16 %v1547_v17, %v1546_v11  ;;  %v5705_v22 = vld [vmem:[#allocation8 + $0x188] sm:$0xff]   ;;  %v5715_v11 = vld [vmem:[#allocation8 + $0x1d8] sm:$0xff]  }
 0x1fa   : > { %5030 = vmatprep.mubr.bf16.mxu1 %v6416_v55  ;;  %v2464_v55 = vld [vmem:[#allocation2 + $0x4a] sm:$0xff]  ;;  %v2784_v17 = vld [vmem:[#allocation2 + $0xf8] sm:$0xff] }
 0x200   : > { %4891 = vmatmul.mubr.bf16.gmra.mrb[60].mxu0 %v6444_v35  ;;  %v6504_v35 = vpack.c.bf16 %v1551_v20, %v1550_v60  ;;  %v5720_v20 = vld [vmem:[#allocation8 + $0x200] sm:$0xff]  }
 0x201   : > { %5031 = vmatmul.mubr.bf16.gmra.mrb[8].mxu1 %v6411_v50  ;;  %4910 = vmatprep.mubr.bf16.mxu0 %v1574_v48  ;;  %v2465_v50 = vld [vmem:[#allocation2 + $0x52] sm:$0xff]  ;;  %v2491_v48 = vld [vmem:[#allocation2 + $0x18a] sm:$0xff] }
 0x202   : > { %5034 = vmatprep.mubr.bf16.mxu1 %v6436_v21  ;;  %v6501_v21 = vpack.c.bf16 %v2465_v50, %v2464_v55  ;;  %v6568_v34 = vpack.c.bf16 %v2491_v48, %v2490_v15  ;;  %v2783_v55 = vld [vmem:[#allocation2 + $0xf0] sm:$0xff]  ;;  %v5719_v50 = vld [vmem:[#allocation8 + $0x1f8] sm:$0xff]  }
 0x203   : > { %v2807_v60 = vpack.c.bf16 %v2784_v17, %v2783_v55  ;;  %v3081_v48 = vld [vmem:[#allocation2 + $0x91] sm:$0xff]  ;;  %v5725_v17 = vld [vmem:[#allocation8 + $0x228] sm:$0xff]  }
 0x204   : > { %v3088_v55 = vld [vmem:[#allocation2 + $0xe1] sm:$0xff] }
 0x208   : > { %4911 = vmatmul.mubr.bf16.vlgmr.msra.gmra.mrb[32].mxu0 %v2492_v52 }
 0x209   : > { %5035 = vmatmul.mubr.bf16.gmra.mrb[12].mxu1 %v6432_v19  ;;  %4914 = vmatprep.mubr.bf16.mxu0 %v6495_v5  ;;  %v2469_v19 = vld [vmem:[#allocation2 + $0x82] sm:$0xff] }
 0x20a   : > { %5054 = vmatprep.mubr.bf16.mxu1 %v2492_v52  ;;  %4943 = vmatpush3.bf16.msra.mxu0 %v6263_v36  ;;  %v2468_v36 = vld [vmem:[#allocation2 + $0x7a] sm:$0xff] }
 0x20b   : > { %4944 = vmatprep.subr.bf16.mxu0 %v6267_v37  ;;  %v6513_v58 = vpack.c.bf16 %v2469_v19, %v2468_v36  ;;  %v2781_v52 = vld [vmem:[#allocation2 + $0xd8] sm:$0xff]  ;;  %v2787_v19 = vld [vmem:[#allocation2 + $0x120] sm:$0xff] }
 0x20e   : > { %4945 = vmatpush3.bf16.msra.mxu0 %v6267_v37  ;;  %v1554_v37 = vld [vmem:[#allocation2 + $0x92] sm:$0xff] }
 0x20f   : > { %4946 = vmatprep.subr.bf16.mxu0 %v6271_v38  ;;  %v6515_v59 = vpack.c.bf16 %v1555_v53, %v1554_v37  ;;  %v2790_v37 = vld [vmem:[#allocation2 + $0x140] sm:$0xff]  ;;  %v2792_v53 = vld [vmem:[#allocation2 + $0x158] sm:$0xff] }
 0x210   : > { %4915 = vmatmul.mubr.bf16.gmra.mrb[36].mxu0 %v6501_v21 }
 0x211   : > { %5055 = vmatmul.mubr.bf16.vlgmr.msra.gmra.mrb[16].mxu1 %v6495_v5  ;;  %4918 = vmatprep.mubr.bf16.mxu0 %v6504_v35 }
 0x212   : > { %5087 = vmatpush3.bf16.msra.mxu1 %v5704_v54  ;;  %5058 = vmatprep.mubr.bf16.mxu1 %v6501_v21  ;;  %v2489_v54 = vld [vmem:[#allocation2 + $0x172] sm:$0xff] }
 0x213   : > { %5088 = vmatprep.subr.bf16.mxu1 %v5705_v22  ;;  %4947 = vmatpush3.bf16.msra.mxu0 %v6271_v38  ;;  %v2472_v38 = vld [vmem:[#allocation2 + $0xaa] sm:$0xff]  ;;  %v6562_v12 = vpack.c.bf16 %v2489_v54, %v2488_v51  ;;  %v3082_v51 = vld [vmem:[#allocation2 + $0x99] sm:$0xff] }
 0x214   : > { %4948 = vmatprep.subr.bf16.mxu0 %v6275_v39  ;;  %v3079_v54 = vld [vmem:[#allocation2 + $0x79] sm:$0xff] }
 0x215   : > { %v3108_v15 = vpack.c.bf16 %v3080_v23, %v3079_v54 }
 0x216   : > { %5089 = vmatpush3.bf16.msra.mxu1 %v5705_v22  ;;  %v2788_v22 = vld [vmem:[#allocation2 + $0x128] sm:$0xff] }
 0x217   : > { %5090 = vmatprep.subr.bf16.mxu1 %v5706_v45  ;;  %4949 = vmatpush3.bf16.msra.mxu0 %v6275_v39  ;;  %v6525_v39 = vpack.c.bf16 %v2473_v62, %v2472_v38  ;;  %v2791_v62 = vld [vmem:[#allocation2 + $0x150] sm:$0xff] }
 0x218   : > { %4919 = vmatmul.mubr.bf16.gmra.mrb[40].mxu0 %v6513_v58  ;;  %4950 = vmatprep.subr.bf16.mxu0 %v6279_v40 }
 0x219   : > { %5059 = vmatmul.mubr.bf16.gmra.mrb[20].mxu1 %v6504_v35  ;;  %4922 = vmatprep.mubr.bf16.mxu0 %v6515_v59 }
 0x21a   : > { %5062 = vmatprep.mubr.bf16.mxu1 %v6513_v58  ;;  %5091 = vmatpush3.bf16.msra.mxu1 %v5706_v45  ;;  %v2809_v45 = vpack.c.bf16 %v2788_v22, %v2787_v19  ;;  %v5727_v22 = vld [vmem:[#allocation8 + $0x238] sm:$0xff]   ;;  %v3094_v19 = vld [vmem:[#allocation2 + $0x129] sm:$0xff] }
 0x21b   : > { %5092 = vmatprep.subr.bf16.mxu1 %v5707_v61  ;;  %4951 = vmatpush3.bf16.msra.mxu0 %v6279_v40  ;;  %v2476_v40 = vld [vmem:[#allocation2 + $0xda] sm:$0xff] }
 0x21c   : > { %4952 = vmatprep.subr.bf16.mxu0 %v6283_v41 }
 0x21e   : > { %5093 = vmatpush3.bf16.msra.mxu1 %v5707_v61  ;;  %v2789_v61 = vld [vmem:[#allocation2 + $0x138] sm:$0xff] }
 0x21f   : > { %5094 = vmatprep.subr.bf16.mxu1 %v5708_v63  ;;  %4953 = vmatpush3.bf16.msra.mxu0 %v6283_v41  ;;  %v6537_v41 = vpack.c.bf16 %v2477_v28, %v2476_v40  ;;  %v2810_v38 = vpack.c.bf16 %v2790_v37, %v2789_v61  ;;  %v2795_v28 = vld [vmem:[#allocation2 + $0x180] sm:$0xff] }
 0x220   : > { %4923 = vmatmul.mubr.bf16.gmra.mrb[44].mxu0 %v6525_v39  ;;  %4954 = vmatprep.subr.bf16.mxu0 %v6287_v43 }
 0x221   : > { %5063 = vmatmul.mubr.bf16.gmra.mrb[24].mxu1 %v6515_v59  ;;  %4926 = vmatprep.mubr.bf16.mxu0 %v6527_v4 }
 0x222   : > { %5066 = vmatprep.mubr.bf16.mxu1 %v6525_v39  ;;  %5095 = vmatpush3.bf16.msra.mxu1 %v5708_v63  ;;  %v2811_v63 = vpack.c.bf16 %v2792_v53, %v2791_v62  ;;  %v3093_v53 = vld [vmem:[#allocation2 + $0x121] sm:$0xff]  ;;  %v3098_v62 = vld [vmem:[#allocation2 + $0x159] sm:$0xff] }
 0x223   : > { %5096 = vmatprep.subr.bf16.mxu1 %v5709_v6  ;;  %4955 = vmatpush3.bf16.msra.mxu0 %v6287_v43  ;;  %v2480_v43 = vld [vmem:[#allocation2 + $0x10a] sm:$0xff]  ;;  %v3115_v61 = vpack.c.bf16 %v3094_v19, %v3093_v53  ;;  %v6655_v53 = vld [vmem:[%s6926_s6] ss:$0 sm:$0xff] }
 0x224   : > { %4956 = vmatprep.subr.bf16.mxu0 %v6291_v44  ;;  %v6546_v27 = vpack.c.bf16 %v2481_v3, %v2480_v43  ;;  %v3076_v43 = vld [vmem:[#allocation2 + $0x51] sm:$0xff]  ;;  %v3078_v3 = vld [vmem:[#allocation2 + $0x69] sm:$0xff] }
 0x226   : > { %5097 = vmatpush3.bf16.msra.mxu1 %v5709_v6  ;;  %v2793_v6 = vld [vmem:[#allocation2 + $0x168] sm:$0xff] }
 0x227   : > { %5098 = vmatprep.subr.bf16.mxu1 %v5710_v8  ;;  %4957 = vmatpush3.bf16.msra.mxu0 %v6291_v44  ;;  %v2484_v44 = vld [vmem:[#allocation2 + $0x13a] sm:$0xff]  ;;  %v2812_v40 = vpack.c.bf16 %v2794_v0, %v2793_v6 }
 0x228   : > { %4927 = vmatmul.mubr.bf16.gmra.mrb[48].mxu0 %v6537_v41  ;;  %v6554_v57 = vpack.c.bf16 %v2485_v30, %v2484_v44  ;;  %v5721_v44 = vld [vmem:[#allocation8 + $0x208] sm:$0xff]   ;;  %v3107_v30 = vpack.c.bf16 %v3078_v3, %v3077_v25  ;;  %v5728_v0 = vld [vmem:[#allocation9] sm:$0xff]  }
 0x229   : > { %5067 = vmatmul.mubr.bf16.gmra.mrb[28].mxu1 %v6527_v4  ;;  %4930 = vmatprep.mubr.bf16.mxu0 %v6539_v13  ;;  %v3103_v25 = vld [vmem:[#allocation2 + $0x199] sm:$0xff] }
 0x22a   : > { %5070 = vmatprep.mubr.bf16.mxu1 %v6537_v41  ;;  %5099 = vmatpush3.bf16.msra.mxu1 %v5710_v8  ;;  %v2813_v8 = vpack.c.bf16 %v2796_v2, %v2795_v28  ;;  %v5729_v2 = vld [vmem:[#allocation9 + $0x8] sm:$0xff]  }
 0x22b   : > { %5100 = vmatprep.subr.bf16.mxu1 %v5711_v16  ;;  %5230 = vmatprep.subr.bf16.mxu0 %v5728_v0 }
 0x22e   : > { %5101 = vmatpush3.bf16.msra.mxu1 %v5711_v16  ;;  %v3105_v16 = vpack.c.bf16 %v3074_v46, %v3073_v10  ;;  %v3100_v46 = vld [vmem:[#allocation2 + $0x171] sm:$0xff]  ;;  %v3102_v10 = vld [vmem:[#allocation2 + $0x189] sm:$0xff] }
 0x22f   : > { %5134 = vmatprep.subr.bf16.mxu1 %v5712_v26 }
 0x230   : > { %4931 = vmatmul.mubr.bf16.gmra.mrb[52].mxu0 %v6546_v27 }
 0x231   : > { %5071 = vmatmul.mubr.bf16.gmra.mrb[0].mxu1 %v6539_v13  ;;  %4934 = vmatprep.mubr.bf16.mxu0 %v6548_v29 }
 0x232   : > { %5074 = vmatprep.mubr.bf16.mxu1 %v6546_v27 }
 0x238   : > { %4935 = vmatmul.mubr.bf16.gmra.mrb[56].mxu0 %v6554_v57 }
 0x239   : > { %5075 = vmatmul.mubr.bf16.gmra.mrb[4].mxu1 %v6548_v29  ;;  %4938 = vmatprep.mubr.bf16.mxu0 %v6556_v42 }
 0x23a   : > { %5078 = vmatprep.mubr.bf16.mxu1 %v6554_v57 }
 0x240   : > { %4939 = vmatmul.mubr.bf16.gmra.mrb[60].mxu0 %v6562_v12 }
 0x241   : > { %5079 = vmatmul.mubr.bf16.gmra.mrb[8].mxu1 %v6556_v42  ;;  %4958 = vmatprep.mubr.bf16.mxu0 %v6446_v49  ;;  %v5714_v49 = vld [vmem:[#allocation8 + $0x1d0] sm:$0xff]  }
 0x242   : > { %5082 = vmatprep.mubr.bf16.mxu1 %v6562_v12 }
 0x248   : > { %4959 = vmatmul.mubr.bf16.vlgmr.msra.gmra.mrb[32].mxu0 %v6448_v56 }
 0x249   : > { %5083 = vmatmul.mubr.bf16.gmra.mrb[12].mxu1 %v6568_v34  ;;  %4962 = vmatprep.mubr.bf16.mxu0 %v6455_v1 }
 0x24a   : > { %5102 = vmatprep.mubr.bf16.mxu1 %v6448_v56  ;;  %v5716_v56 = vld [vmem:[#allocation8 + $0x1e0] sm:$0xff]   ;;  %5231 = vmatpush3.bf16.msra.mxu0 %v5728_v0 }
 0x24b   : > { %5232 = vmatprep.subr.bf16.mxu0 %v5729_v2 }
 0x24e   : > { %5233 = vmatpush3.bf16.msra.mxu0 %v5729_v2 }
 0x250   : > { %4963 = vmatmul.mubr.bf16.gmra.mrb[36].mxu0 %v6457_v7 }
 0x251   : > { %5103 = vmatmul.mubr.bf16.vlgmr.msra.gmra.mrb[16].mxu1 %v6455_v1  ;;  %4966 = vmatprep.mubr.bf16.mxu0 %v6463_v14  ;;  %v5717_v1 = vld [vmem:[#allocation8 + $0x1e8] sm:$0xff]  }
 0x252   : > { %5135 = vmatpush3.bf16.msra.mxu1 %v5712_v26  ;;  %5106 = vmatprep.mubr.bf16.mxu1 %v6457_v7  ;;  %v5718_v7 = vld [vmem:[#allocation8 + $0x1f0] sm:$0xff]  }
 0x253   : > { %5136 = vmatprep.subr.bf16.mxu1 %v5713_v9  ;;  %v3075_v26 = vld [vmem:[#allocation2 + $0x49] sm:$0xff] }
 0x254   : > { %v3106_v24 = vpack.c.bf16 %v3076_v43, %v3075_v26  ;;  %v5731_v43 = vld [vmem:[#allocation9 + $0x18] sm:$0xff]   ;;  %v3101_v26 = vld [vmem:[#allocation2 + $0x181] sm:$0xff] }
 0x256   : > { %5137 = vmatpush3.bf16.msra.mxu1 %v5713_v9  ;;  %v3109_v9 = vpack.c.bf16 %v3082_v51, %v3081_v48 }
 0x257   : > { %5138 = vmatprep.subr.bf16.mxu1 %v5714_v49 }
 0x258   : > { %4967 = vmatmul.mubr.bf16.gmra.mrb[40].mxu0 %v6465_v47 }
 0x259   : > { %5107 = vmatmul.mubr.bf16.gmra.mrb[20].mxu1 %v6463_v14  ;;  %4970 = vmatprep.mubr.bf16.mxu0 %v6471_v31  ;;  %v2782_v14 = vld [vmem:[#allocation2 + $0xe0] sm:$0xff] }
 0x25a   : > { %5110 = vmatprep.mubr.bf16.mxu1 %v6465_v47  ;;  %5139 = vmatpush3.bf16.msra.mxu1 %v5714_v49  ;;  %v2806_v47 = vpack.c.bf16 %v2782_v14, %v2781_v52  ;;  %v5724_v49 = vld [vmem:[#allocation8 + $0x220] sm:$0xff]  }
 0x25b   : > { %5140 = vmatprep.subr.bf16.mxu1 %v5715_v11  ;;  %v3085_v14 = vld [vmem:[#allocation2 + $0xc1] sm:$0xff] }
 0x25e   : > { %5141 = vmatpush3.bf16.msra.mxu1 %v5715_v11  ;;  %v3084_v11 = vld [vmem:[#allocation2 + $0xb1] sm:$0xff] }
 0x25f   : > { %5142 = vmatprep.subr.bf16.mxu1 %v5716_v56 }
 0x260   : > { %4971 = vmatmul.mubr.bf16.gmra.mrb[44].mxu0 %v6473_v33 }
 0x261   : > { %5111 = vmatmul.mubr.bf16.gmra.mrb[24].mxu1 %v6471_v31  ;;  %v2786_v31 = vld [vmem:[#allocation2 + $0x110] sm:$0xff] }
 0x262   : > { %5114 = vmatprep.mubr.bf16.mxu1 %v6473_v33  ;;  %5143 = vmatpush3.bf16.msra.mxu1 %v5716_v56  ;;  %v2785_v33 = vld [vmem:[#allocation2 + $0x108] sm:$0xff] }
 0x263   : > { %5144 = vmatprep.subr.bf16.mxu1 %v5717_v1  ;;  %v2808_v36 = vpack.c.bf16 %v2786_v31, %v2785_v33  ;;  %v3086_v56 = vld [vmem:[#allocation2 + $0xc9] sm:$0xff]  ;;  %v3089_v31 = vld [vmem:[#allocation2 + $0xf1] sm:$0xff] }
 0x264   : > { %v3111_v52 = vpack.c.bf16 %v3086_v56, %v3085_v14  ;;  %v5733_v14 = vld [vmem:[#allocation9 + $0x28] sm:$0xff]  }
 0x266   : > { %5145 = vmatpush3.bf16.msra.mxu1 %v5717_v1  ;;  %v3083_v1 = vld [vmem:[#allocation2 + $0xa9] sm:$0xff] }
 0x267   : > { %5146 = vmatprep.subr.bf16.mxu1 %v5718_v7 }
 0x269   : > { %5115 = vmatmul.mubr.bf16.gmra.mrb[28].mxu1 %v2806_v47  ;;  %v5726_v47 = vld [vmem:[#allocation8 + $0x230] sm:$0xff]  }
 0x26a   : > { %5118 = vmatprep.mubr.bf16.mxu1 %v2807_v60  ;;  %5147 = vmatpush3.bf16.msra.mxu1 %v5718_v7  ;;  %v3110_v7 = vpack.c.bf16 %v3084_v11, %v3083_v1  ;;  %v3087_v60 = vld [vmem:[#allocation2 + $0xd9] sm:$0xff] }
 0x26b   : > { %5148 = vmatprep.subr.bf16.mxu1 %v5719_v50 }
 0x26e   : > { %5149 = vmatpush3.bf16.msra.mxu1 %v5719_v50  ;;  %v3090_v50 = vld [vmem:[#allocation2 + $0xf9] sm:$0xff] }
 0x26f   : > { %5182 = vmatprep.subr.bf16.mxu1 %v5720_v20  ;;  %v3113_v33 = vpack.c.bf16 %v3090_v50, %v3089_v31  ;;  %v5734_v50 = vld [vmem:[#allocation9 + $0x30] sm:$0xff]  }
 0x271   : > { %5119 = vmatmul.mubr.bf16.gmra.mrb[0].mxu1 %v2808_v36  ;;  %v3092_v36 = vld [vmem:[#allocation2 + $0x111] sm:$0xff] }
 0x272   : > { %5122 = vmatprep.mubr.bf16.mxu1 %v2809_v45  ;;  %v3091_v45 = vld [vmem:[#allocation2 + $0x109] sm:$0xff] }
 0x273   : > { %v3114_v37 = vpack.c.bf16 %v3092_v36, %v3091_v45  ;;  %v6650_v36 = vld [vmem:[%s6925_s5] ss:$0 sm:$0xff] }
 0x279   : > { %5123 = vmatmul.mubr.bf16.gmra.mrb[4].mxu1 %v2810_v38  ;;  %v3096_v38 = vld [vmem:[#allocation2 + $0x141] sm:$0xff] }
 0x27a   : > { %5126 = vmatprep.mubr.bf16.mxu1 %v2811_v63  ;;  %v3095_v63 = vld [vmem:[#allocation2 + $0x139] sm:$0xff] }
 0x27b   : > { %v3116_v6 = vpack.c.bf16 %v3096_v38, %v3095_v63 }
 0x281   : > { %5127 = vmatmul.mubr.bf16.gmra.mrb[8].mxu1 %v2812_v40  ;;  %v3097_v40 = vld [vmem:[#allocation2 + $0x151] sm:$0xff] }
 0x282   : > { %5130 = vmatprep.mubr.bf16.mxu1 %v2813_v8  ;;  %v3117_v28 = vpack.c.bf16 %v3098_v62, %v3097_v40  ;;  %v5730_v8 = vld [vmem:[#allocation9 + $0x10] sm:$0xff]  }
 0x283   : > { %5234 = vmatprep.subr.bf16.mxu0 %v5730_v8 }
 0x284   : > { %5235 = vmatpush3.bf16.msra.mxu0 %v5730_v8 }
 0x285   : > { %5236 = vmatprep.subr.bf16.mxu0 %v5731_v43 }
 0x288   : > { %5237 = vmatpush3.bf16.msra.mxu0 %v5731_v43 }
 0x289   : > { %5131 = vmatmul.mubr.bf16.gmra.mrb[12].mxu1 %v6430_v18  ;;  %v5723_v18 = vld [vmem:[#allocation8 + $0x218] sm:$0xff]  }
 0x28a   : > { %5150 = vmatprep.mubr.bf16.mxu1 %v3105_v16  ;;  %v3099_v16 = vld [vmem:[#allocation2 + $0x169] sm:$0xff] }
 0x28b   : > { %v3118_v3 = vpack.c.bf16 %v3100_v46, %v3099_v16 }
 0x291   : > { %5151 = vmatmul.mubr.bf16.vlgmr.msra.gmra.mrb[16].mxu1 %v3106_v24  ;;  %v3119_v24 = vpack.c.bf16 %v3102_v10, %v3101_v26 }
 0x292   : > { %5183 = vmatpush3.bf16.msra.mxu1 %v5720_v20  ;;  %5154 = vmatprep.mubr.bf16.mxu1 %v3107_v30  ;;  %v3112_v20 = vpack.c.bf16 %v3088_v55, %v3087_v60  ;;  %v5732_v30 = vld [vmem:[#allocation9 + $0x20] sm:$0xff]   ;;  %v5735_v60 = vld [vmem:[#allocation9 + $0x38] sm:$0xff]  }
 0x293   : > { %5184 = vmatprep.subr.bf16.mxu1 %v5721_v44  ;;  %5238 = vmatprep.subr.bf16.mxu0 %v5732_v30 }
 0x294   : > { %5239 = vmatpush3.bf16.msra.mxu0 %v5732_v30 }
 0x295   : > { %5240 = vmatprep.subr.bf16.mxu0 %v5733_v14 }
 0x296   : > { %5185 = vmatpush3.bf16.msra.mxu1 %v5721_v44  ;;  %v3104_v44 = vld [vmem:[#allocation2 + $0x1a1] sm:$0xff] }
 0x297   : > { %5186 = vmatprep.subr.bf16.mxu1 %v5722_v32 }
 0x298   : > { %5241 = vmatpush3.bf16.msra.mxu0 %v5733_v14 }
 0x299   : > { %5155 = vmatmul.mubr.bf16.gmra.mrb[20].mxu1 %v3108_v15  ;;  %5242 = vmatprep.subr.bf16.mxu0 %v5734_v50 }
 0x29a   : > { %5158 = vmatprep.mubr.bf16.mxu1 %v3109_v9  ;;  %5187 = vmatpush3.bf16.msra.mxu1 %v5722_v32  ;;  %v3120_v32 = vpack.c.bf16 %v3104_v44, %v3103_v25 }
 0x29b   : > { %5188 = vmatprep.subr.bf16.mxu1 %v5723_v18 }
 0x29c   : > { %5243 = vmatpush3.bf16.msra.mxu0 %v5734_v50 }
 0x29d   : > { %5244 = vmatprep.subr.bf16.mxu0 %v5735_v60 }
 0x29e   : > { %5189 = vmatpush3.bf16.msra.mxu1 %v5723_v18 }
 0x29f   : > { %5190 = vmatprep.subr.bf16.mxu1 %v5724_v49 }
 0x2a0   : > { %5245 = vmatpush3.bf16.msra.mxu0 %v5735_v60 }
 0x2a1   : > { %5159 = vmatmul.mubr.bf16.gmra.mrb[24].mxu1 %v3110_v7 }
 0x2a2   : > { %5162 = vmatprep.mubr.bf16.mxu1 %v3111_v52  ;;  %5191 = vmatpush3.bf16.msra.mxu1 %v5724_v49 }
 0x2a3   : > { %5192 = vmatprep.subr.bf16.mxu1 %v5725_v17 }
 0x2a6   : > { %5193 = vmatpush3.bf16.msra.mxu1 %v5725_v17 }
 0x2a7   : > { %5194 = vmatprep.subr.bf16.mxu1 %v5726_v47 }
 0x2a9   : > { %5163 = vmatmul.mubr.bf16.gmra.mrb[28].mxu1 %v3112_v20 }
 0x2aa   : > { %5166 = vmatprep.mubr.bf16.mxu1 %v3113_v33  ;;  %5195 = vmatpush3.bf16.msra.mxu1 %v5726_v47 }
 0x2ab   : > { %5196 = vmatprep.subr.bf16.mxu1 %v5727_v22 }
 0x2ae   : > { %5197 = vmatpush3.bf16.msra.mxu1 %v5727_v22 }
 0x2b1   : > { %5167 = vmatmul.mubr.bf16.gmra.mrb[0].mxu1 %v3114_v37 }
 0x2b2   : > { %5170 = vmatprep.mubr.bf16.mxu1 %v3115_v61 }
 0x2b9   : > { %5171 = vmatmul.mubr.bf16.gmra.mrb[4].mxu1 %v3116_v6 }
 0x2ba   : > { %5174 = vmatprep.mubr.bf16.mxu1 %v3117_v28 }
 0x2c1   : > { %5175 = vmatmul.mubr.bf16.gmra.mrb[8].mxu1 %v3118_v3 }
 0x2c2   : > { %5178 = vmatprep.mubr.bf16.mxu1 %v3119_v24 }
 0x2c9   : > { %5179 = vmatmul.mubr.bf16.gmra.mrb[12].mxu1 %v3120_v32 }
 0x2ca   : > { %5198 = vmatprep.mubr.bf16.mxu1 %v6495_v5 }
 0x2d1   : > { %5199 = vmatmul.mubr.bf16.vlgmr.msra.gmra.mrb[16].mxu1 %v6501_v21 }
 0x2d2   : > { %5202 = vmatprep.mubr.bf16.mxu1 %v6504_v35 }
 0x2d9   : > { %5203 = vmatmul.mubr.bf16.gmra.mrb[20].mxu1 %v6513_v58 }
 0x2da   : > { %5206 = vmatprep.mubr.bf16.mxu1 %v6515_v59  ;;  %v3409_v59 = vld [vmem:[#allocation2 + $0x19a] sm:$0xff] }
 0x2e1   : > { %5207 = vmatmul.mubr.bf16.gmra.mrb[24].mxu1 %v6525_v39  ;;  %v3410_v39 = vld [vmem:[#allocation2 + $0x1a2] sm:$0xff] }
 0x2e2   : > { %5210 = vmatprep.mubr.bf16.mxu1 %v6527_v4 }
 0x2e9   : > { %5211 = vmatmul.mubr.bf16.gmra.mrb[28].mxu1 %v6537_v41 }
 0x2ea   : > { %5214 = vmatprep.mubr.bf16.mxu1 %v6539_v13  ;;  %v3426_v13 = vpack.c.bf16 %v3410_v39, %v3409_v59 }
 0x2f1   : > { %5215 = vmatmul.mubr.bf16.gmra.mrb[0].mxu1 %v6546_v27 }
 0x2f2   : > { %5218 = vmatprep.mubr.bf16.mxu1 %v6548_v29 }
 0x2f9   : > { %5219 = vmatmul.mubr.bf16.gmra.mrb[4].mxu1 %v6554_v57 }
 0x2fa   : > { %5222 = vmatprep.mubr.bf16.mxu1 %v6556_v42 }
 0x2fb   : > { %v6599_v5 = vpop.f32.mrb[48].mxu0 }
 0x2fc   : > { %v6601_v21 = vpop.f32.mrb[49].mxu0 }
 0x2fd   : > { %v6603_v35 = vpop.f32.mrb[50].mxu0 }
 0x2fe   : > { %v6605_v58 = vpop.f32.mrb[51].mxu0 }
 0x301   : > { %5223 = vmatmul.mubr.bf16.gmra.mrb[8].mxu1 %v6562_v12 }
 0x302   : > { %5226 = vmatprep.mubr.bf16.mxu1 %v6568_v34 }
 0x303   : > { %v6609_v4 = vpop.f32.mrb[52].mxu0 }
 0x304   : > { %v6611_v41 = vpop.f32.mrb[53].mxu0 }
 0x305   : > { %v6613_v27 = vpop.f32.mrb[54].mxu0 }
 0x306   : > { %v6615_v29 = vpop.f32.mrb[55].mxu0 }
 0x309   : > { %5227 = vmatmul.mubr.bf16.gmra.mrb[12].mxu1 %v3426_v13 }
 0x30b   : > { %v6617_v57 = vpop.f32.mrb[56].mxu0 }
 0x30c   : > { %v6619_v42 = vpop.f32.mrb[57].mxu0 }
 0x30d   : > { %v6621_v23 = vpop.f32.mrb[58].mxu0 }
 0x30e   : > { %v6623_v12 = vpop.f32.mrb[59].mxu0 }
 0x313   : > { %v6625_v34 = vpop.f32.mrb[60].mxu0 }
 0x314   : > { %v6627_v51 = vpop.f32.mrb[61].mxu0 }
 0x315   : > { %v6629_v54 = vpop.f32.mrb[62].mxu0 }
 0x316   : > { %v6631_v15 = vpop.f32.mrb[63].mxu0 }
 0x31b   : > { %v4960_v48 = vpop.f32.mrb[32].mxu0 }
 0x31c   : > { %v1995_v18 = vpop.f32.mrb[33].mxu0 }
 0x31d   : > { %v4961_v9 = vpop.f32.mrb[34].mxu0 }
 0x31e   : > { %v1998_v49 = vpop.f32.mrb[35].mxu0 }
 0x323   : > { %v4964_v11 = vpop.f32.mrb[36].mxu0 }
 0x324   : > { %v2011_v56 = vpop.f32.mrb[37].mxu0 }
 0x325   : > { %v4965_v1 = vpop.f32.mrb[38].mxu0 }
 0x326   : > { %v2014_v7 = vpop.f32.mrb[39].mxu0 }
 0x32b   : > { %v4968_v17 = vpop.f32.mrb[40].mxu0 }
 0x32c   : > { %v6633_v52 = vpop.f32.mrb[41].mxu0 }
 0x32d   : > { %v6635_v47 = vpop.f32.mrb[42].mxu0 }
 0x32e   : > { %v6637_v55 = vpop.f32.mrb[43].mxu0 }
 0x333   : > { %v6639_v20 = vpop.f32.mrb[44].mxu0 }
 0x334   : > { %v6641_v31 = vpop.f32.mrb[45].mxu0 }
 0x335   : > { %v6643_v22 = vpop.f32.mrb[46].mxu0 }
 0x336   : > { %v6645_v33 = vpop.f32.mrb[47].mxu0 }
 0x3a4   : > { %v5200_v19 = vpop.f32.mrb[16].mxu1 }
 0x3a5   : > { %v5294_v45 = vadd.f32 %v5200_v19, %v4960_v48  ;;  %v3526_v37 = vpop.f32.mrb[17].mxu1 }
 0x3a6   : > { %v5295_v61 = vadd.f32 %v3526_v37, %v1995_v18  ;;  %v5201_v38 = vpop.f32.mrb[18].mxu1 }
 0x3a7   : > { %v3693_v62 = vmul.f32 %v5294_v45, %v6650_v36  ;;  %v5296_v63 = vadd.f32 %v5201_v38, %v4961_v9  ;;  %v3529_v0 = vpop.f32.mrb[19].mxu1 }
 0x3a8   : > { %v3691_v2 = vmul.f32 %v5295_v61, %v6650_v36  ;;  %v5297_v6 = vadd.f32 %v3529_v0, %v1998_v49 }
 0x3a9   : > { %v3731_v40 = vadd.f32 %v6655_v53, %v3693_v62  ;;  %v3694_v28 = vmul.f32 %v5296_v63, %v6650_v36 }
 0x3aa   : > { %v3729_v8 = vadd.f32 %v6655_v53, %v3691_v2  ;;  %v3692_v46 = vmul.f32 %v5297_v6, %v6650_v36 }
 0x3ab   : > { %v3732_v10 = vadd.f32 %v6655_v53, %v3694_v28  ;;  %v3763_v3 = vmax.f32 %v3731_v40, 0.0 }
 0x3ac   : > { %v3730_v16 = vadd.f32 %v6655_v53, %v3692_v46  ;;  %v5204_v43 = vpop.f32.mrb[20].mxu1  ;;  %v3761_v44 = vmax.f32 %v3729_v8, 0.0 }
 0x3ad   : > { %v3764_v26 = vmax.f32 %v3732_v10, 0.0  ;;  %v5298_v24 = vadd.f32 %v5204_v43, %v4964_v11  ;;  %v3542_v25 = vpop.f32.mrb[21].mxu1 }
 0x3ae   : > { %v3762_v30 = vmax.f32 %v3730_v16, 0.0  ;;  %v5299_v32 = vadd.f32 %v3542_v25, %v2011_v56  ;;  %v5205_v59 = vpop.f32.mrb[22].mxu1 }
 0x3af   : > { %v3794_v39 = vpack.c.bf16 %v3764_v26, %v3763_v3  ;;  %v3697_v13 = vmul.f32 %v5298_v24, %v6650_v36  ;;  %v5300_v48 = vadd.f32 %v5205_v59, %v4965_v1  ;;  %v3545_v18 = vpop.f32.mrb[23].mxu1 }
 0x3b0   : > { %v3695_v9 = vmul.f32 %v5299_v32, %v6650_v36  ;;  %v5301_v49 = vadd.f32 %v3545_v18, %v2014_v7  ;;  %v3793_v14 = vpack.c.bf16 %v3762_v30, %v3761_v44 }
 0x3b1   : > { %v3735_v50 = vadd.f32 %v6655_v53, %v3697_v13  ;;  %v3698_v60 = vmul.f32 %v5300_v48, %v6650_v36 }
 0x3b2   : > { %v3733_v11 = vadd.f32 %v6655_v53, %v3695_v9  ;;  %v3696_v19 = vmul.f32 %v5301_v49, %v6650_v36  ;;  %5246 = vmatprep.mubr.bf16.mxu0 %v3793_v14 }
 0x3b3   : > { %v3736_v56 = vadd.f32 %v6655_v53, %v3698_v60  ;;  %5247 = vmatmul.mubr.bf16.vlgmr.msra.gmra.mrb[64].mxu0 %v3794_v39  ;;  %v3767_v37 = vmax.f32 %v3735_v50, 0.0 }
 0x3b4   : > { %v3734_v45 = vadd.f32 %v6655_v53, %v3696_v19  ;;  %v5208_v1 = vpop.f32.mrb[24].mxu1  ;;  %v3765_v62 = vmax.f32 %v3733_v11, 0.0 }
 0x3b5   : > { %v3768_v61 = vmax.f32 %v3736_v56, 0.0  ;;  %v5302_v38 = vadd.f32 %v5208_v1, %v4968_v17  ;;  %v3558_v7 = vpop.f32.mrb[25].mxu1 }
 0x3b6   : > { %v3766_v63 = vmax.f32 %v3734_v45, 0.0  ;;  %v5303_v0 = vadd.f32 %v3558_v7, %v6633_v52  ;;  %v5209_v2 = vpop.f32.mrb[26].mxu1 }
 0x3b7   : > { %v3701_v6 = vmul.f32 %v5302_v38, %v6650_v36  ;;  %v5304_v40 = vadd.f32 %v5209_v2, %v6635_v47  ;;  %v3561_v28 = vpop.f32.mrb[27].mxu1  ;;  %v3796_v8 = vpack.c.bf16 %v3768_v61, %v3767_v37 }
 0x3b8   : > { %v3699_v46 = vmul.f32 %v5303_v0, %v6650_v36  ;;  %v5305_v10 = vadd.f32 %v3561_v28, %v6637_v55  ;;  %v3795_v16 = vpack.c.bf16 %v3766_v63, %v3765_v62 }
 0x3b9   : > { %v3739_v43 = vadd.f32 %v6655_v53, %v3701_v6  ;;  %v3702_v17 = vmul.f32 %v5304_v40, %v6650_v36 }
 0x3ba   : > { %v3737_v3 = vadd.f32 %v6655_v53, %v3699_v46  ;;  %v3700_v52 = vmul.f32 %v5305_v10, %v6650_v36  ;;  %5250 = vmatprep.mubr.bf16.mxu0 %v3795_v16 }
 0x3bb   : > { %v3740_v26 = vadd.f32 %v6655_v53, %v3702_v17  ;;  %5251 = vmatmul.mubr.bf16.gmra.mrb[68].mxu0 %v3796_v8  ;;  %v3771_v25 = vmax.f32 %v3739_v43, 0.0 }
 0x3bc   : > { %v3738_v47 = vadd.f32 %v6655_v53, %v3700_v52  ;;  %v5212_v24 = vpop.f32.mrb[28].mxu1  ;;  %v3769_v32 = vmax.f32 %v3737_v3, 0.0 }
 0x3bd   : > { %v3772_v44 = vmax.f32 %v3740_v26, 0.0  ;;  %v5306_v55 = vadd.f32 %v5212_v24, %v6639_v20  ;;  %v3574_v30 = vpop.f32.mrb[29].mxu1 }
 0x3be   : > { %v3770_v59 = vmax.f32 %v3738_v47, 0.0  ;;  %v5307_v39 = vadd.f32 %v3574_v30, %v6641_v31  ;;  %v5213_v13 = vpop.f32.mrb[30].mxu1 }
 0x3bf   : > { %v3705_v48 = vmul.f32 %v5306_v55, %v6650_v36  ;;  %v5308_v18 = vadd.f32 %v5213_v13, %v6643_v22  ;;  %v3577_v9 = vpop.f32.mrb[31].mxu1  ;;  %v3798_v49 = vpack.c.bf16 %v3772_v44, %v3771_v25 }
 0x3c0   : > { %v3703_v14 = vmul.f32 %v5307_v39, %v6650_v36  ;;  %v5309_v50 = vadd.f32 %v3577_v9, %v6645_v33  ;;  %v3797_v60 = vpack.c.bf16 %v3770_v59, %v3769_v32 }
 0x3c1   : > { %v3743_v11 = vadd.f32 %v6655_v53, %v3705_v48  ;;  %v3706_v20 = vmul.f32 %v5308_v18, %v6650_v36 }
 0x3c2   : > { %v3741_v19 = vadd.f32 %v6655_v53, %v3703_v14  ;;  %v3704_v31 = vmul.f32 %v5309_v50, %v6650_v36  ;;  %5254 = vmatprep.mubr.bf16.mxu0 %v3797_v60 }
 0x3c3   : > { %v3744_v56 = vadd.f32 %v6655_v53, %v3706_v20  ;;  %5255 = vmatmul.mubr.bf16.gmra.mrb[72].mxu0 %v3798_v49  ;;  %v3775_v1 = vmax.f32 %v3743_v11, 0.0 }
 0x3c4   : > { %v3742_v22 = vadd.f32 %v6655_v53, %v3704_v31  ;;  %v5216_v45 = vpop.f32.mrb[0].mxu1  ;;  %v3773_v38 = vmax.f32 %v3741_v19, 0.0 }
 0x3c5   : > { %v3776_v37 = vmax.f32 %v3744_v56, 0.0  ;;  %v5310_v33 = vadd.f32 %v5216_v45, %v6599_v5  ;;  %v3590_v61 = vpop.f32.mrb[1].mxu1 }
 0x3c6   : > { %v3774_v7 = vmax.f32 %v3742_v22, 0.0  ;;  %v5311_v62 = vadd.f32 %v3590_v61, %v6601_v21  ;;  %v5217_v63 = vpop.f32.mrb[2].mxu1 }
 0x3c7   : > { %v3709_v0 = vmul.f32 %v5310_v33, %v6650_v36  ;;  %v5312_v2 = vadd.f32 %v5217_v63, %v6603_v35  ;;  %v3593_v6 = vpop.f32.mrb[3].mxu1  ;;  %v3800_v40 = vpack.c.bf16 %v3776_v37, %v3775_v1 }
 0x3c8   : > { %v3707_v28 = vmul.f32 %v5311_v62, %v6650_v36  ;;  %v5313_v8 = vadd.f32 %v3593_v6, %v6605_v58  ;;  %v3799_v46 = vpack.c.bf16 %v3774_v7, %v3773_v38 }
 0x3c9   : > { %v3747_v10 = vadd.f32 %v6655_v53, %v3709_v0  ;;  %v3710_v5 = vmul.f32 %v5312_v2, %v6650_v36 }
 0x3ca   : > { %v3745_v16 = vadd.f32 %v6655_v53, %v3707_v28  ;;  %v3708_v21 = vmul.f32 %v5313_v8, %v6650_v36  ;;  %5258 = vmatprep.mubr.bf16.mxu0 %v3799_v46 }
 0x3cb   : > { %v3748_v43 = vadd.f32 %v6655_v53, %v3710_v5  ;;  %5259 = vmatmul.mubr.bf16.gmra.mrb[76].mxu0 %v3800_v40  ;;  %v3779_v3 = vmax.f32 %v3747_v10, 0.0 }
 0x3cc   : > { %v3746_v35 = vadd.f32 %v6655_v53, %v3708_v21  ;;  %v5220_v17 = vpop.f32.mrb[4].mxu1  ;;  %v3777_v47 = vmax.f32 %v3745_v16, 0.0 }
 0x3cd   : > { %v3780_v52 = vmax.f32 %v3748_v43, 0.0  ;;  %v5314_v58 = vadd.f32 %v5220_v17, %v6609_v4  ;;  %v3606_v26 = vpop.f32.mrb[5].mxu1 }
 0x3ce   : > { %v3778_v24 = vmax.f32 %v3746_v35, 0.0  ;;  %v5315_v25 = vadd.f32 %v3606_v26, %v6611_v41  ;;  %v5221_v44 = vpop.f32.mrb[6].mxu1 }
 0x3cf   : > { %v3713_v55 = vmul.f32 %v5314_v58, %v6650_v36  ;;  %v5316_v30 = vadd.f32 %v5221_v44, %v6613_v27  ;;  %v3609_v32 = vpop.f32.mrb[7].mxu1  ;;  %v3802_v59 = vpack.c.bf16 %v3780_v52, %v3779_v3 }
 0x3d0   : > { %v3711_v39 = vmul.f32 %v5315_v25, %v6650_v36  ;;  %v5317_v13 = vadd.f32 %v3609_v32, %v6615_v29  ;;  %v3801_v48 = vpack.c.bf16 %v3778_v24, %v3777_v47  ;;  %v5753_v32 = vld [vmem:[%s6233_s12 + $0x8] sm:$0xff]  }
 0x3d1   : > { %v3751_v18 = vadd.f32 %v6655_v53, %v3713_v55  ;;  %v3714_v4 = vmul.f32 %v5316_v30, %v6650_v36  ;;  %v6752_v30 = vld [vmem:[%s6955_s23] ss:$0 sm:$0xff] }
 0x3d2   : > { %v3749_v9 = vadd.f32 %v6655_v53, %v3711_v39  ;;  %v3712_v41 = vmul.f32 %v5317_v13, %v6650_v36  ;;  %5262 = vmatprep.mubr.bf16.mxu0 %v3801_v48  ;;  %v5754_v48 = vld [vmem:[%s6233_s12] sm:$0xff]  }
 0x3d3   : > { %v3752_v49 = vadd.f32 %v6655_v53, %v3714_v4  ;;  %5263 = vmatmul.mubr.bf16.gmra.mrb[80].mxu0 %v3802_v59  ;;  %v3783_v50 = vmax.f32 %v3751_v18, 0.0  ;;  %v4112_v59 = vunpack.c.l.bf16 %v5753_v32  ;;  %v4110_v18 = vunpack.c.l.bf16 %v5754_v48 }
 0x3d4   : > { %v3750_v27 = vadd.f32 %v6655_v53, %v3712_v41  ;;  %v5224_v14 = vpop.f32.mrb[8].mxu1  ;;  %v3781_v20 = vmax.f32 %v3749_v9, 0.0  ;;  %v4113_v41 = vunpack.c.h.bf16 %v5753_v32 }
 0x3d5   : > { %v3784_v60 = vmax.f32 %v3752_v49, 0.0  ;;  %v5318_v29 = vadd.f32 %v5224_v14, %v6617_v57  ;;  %v3622_v11 = vpop.f32.mrb[9].mxu1 }
 0x3d6   : > { %v3782_v19 = vmax.f32 %v3750_v27, 0.0  ;;  %v5319_v31 = vadd.f32 %v3622_v11, %v6619_v42  ;;  %v5225_v56 = vpop.f32.mrb[10].mxu1 }
 0x3d7   : > { %v3717_v22 = vmul.f32 %v5318_v29, %v6650_v36  ;;  %v5320_v45 = vadd.f32 %v5225_v56, %v6621_v23  ;;  %v3625_v1 = vpop.f32.mrb[11].mxu1  ;;  %v3804_v37 = vpack.c.bf16 %v3784_v60, %v3783_v50  ;;  %v4111_v50 = vunpack.c.h.bf16 %v5754_v48 }
 0x3d8   : > { %v3715_v33 = vmul.f32 %v5319_v31, %v6650_v36  ;;  %v5321_v61 = vadd.f32 %v3625_v1, %v6623_v12  ;;  %v3803_v38 = vpack.c.bf16 %v3782_v19, %v3781_v20 }
 0x3d9   : > { %v3755_v7 = vadd.f32 %v6655_v53, %v3717_v22  ;;  %v3718_v57 = vmul.f32 %v5320_v45, %v6650_v36 }
 0x3da   : > { %v3753_v62 = vadd.f32 %v6655_v53, %v3715_v33  ;;  %v3716_v42 = vmul.f32 %v5321_v61, %v6650_v36  ;;  %5266 = vmatprep.mubr.bf16.mxu0 %v3803_v38  ;;  %v5755_v33 = vld [vmem:[%s6233_s12 + $0x18] sm:$0xff]  }
 0x3db   : > { %v3756_v63 = vadd.f32 %v6655_v53, %v3718_v57  ;;  %5267 = vmatmul.mubr.bf16.gmra.mrb[84].mxu0 %v3804_v37  ;;  %v3787_v2 = vmax.f32 %v3755_v7, 0.0  ;;  %v4116_v61 = vunpack.c.l.bf16 %v5755_v33 }
 0x3dc   : > { %v3754_v23 = vadd.f32 %v6655_v53, %v3716_v42  ;;  %v5228_v0 = vpop.f32.mrb[12].mxu1  ;;  %v3785_v28 = vmax.f32 %v3753_v62, 0.0  ;;  %v5756_v62 = vld [vmem:[%s6233_s12 + $0x10] sm:$0xff]  }
 0x3dd   : > { %v3788_v6 = vmax.f32 %v3756_v63, 0.0  ;;  %v5322_v12 = vadd.f32 %v5228_v0, %v6625_v34  ;;  %v3638_v40 = vpop.f32.mrb[13].mxu1  ;;  %v4114_v42 = vunpack.c.l.bf16 %v5756_v62 }
 0x3de   : > { %v3786_v8 = vmax.f32 %v3754_v23, 0.0  ;;  %v5323_v46 = vadd.f32 %v3638_v40, %v6627_v51  ;;  %v5229_v10 = vpop.f32.mrb[14].mxu1 }
 0x3df   : > { %v3721_v5 = vmul.f32 %v5322_v12, %v6650_v36  ;;  %v5324_v16 = vadd.f32 %v5229_v10, %v6629_v54  ;;  %v3641_v21 = vpop.f32.mrb[15].mxu1  ;;  %v3806_v43 = vpack.c.bf16 %v3788_v6, %v3787_v2  ;;  %v4117_v2 = vunpack.c.h.bf16 %v5755_v33 }
 0x3e0   : > { %v3719_v35 = vmul.f32 %v5323_v46, %v6650_v36  ;;  %v5325_v17 = vadd.f32 %v3641_v21, %v6631_v15  ;;  %v3805_v3 = vpack.c.bf16 %v3786_v8, %v3785_v28  ;;  %v4115_v28 = vunpack.c.h.bf16 %v5756_v62 }
 0x3e1   : > { %v3759_v52 = vadd.f32 %v6655_v53, %v3721_v5  ;;  %v3722_v34 = vmul.f32 %v5324_v16, %v6650_v36 }
 0x3e2   : > { %v3757_v58 = vadd.f32 %v6655_v53, %v3719_v35  ;;  %v3720_v51 = vmul.f32 %v5325_v17, %v6650_v36  ;;  %5270 = vmatprep.mubr.bf16.mxu0 %v3805_v3  ;;  %v6747_v36 = vld [vmem:[%s6928_s8] ss:$0 sm:$0xff] }
 0x3e3   : > { %v3760_v26 = vadd.f32 %v6655_v53, %v3722_v34  ;;  %5271 = vmatmul.mubr.bf16.gmra.mrb[88].mxu0 %v3806_v43  ;;  %v3791_v47 = vmax.f32 %v3759_v52, 0.0  ;;  %v5757_v34 = vld [vmem:[%s6233_s12 + $0x28] sm:$0xff]  }
 0x3e4   : > { %v3758_v54 = vadd.f32 %v6655_v53, %v3720_v51  ;;  %v3789_v15 = vmax.f32 %v3757_v58, 0.0  ;;  %v4120_v58 = vunpack.c.l.bf16 %v5757_v34 }
 0x3e5   : > { %v3792_v24 = vmax.f32 %v3760_v26, 0.0 }
 0x3e6   : > { %v3790_v25 = vmax.f32 %v3758_v54, 0.0 }
 0x3e7   : > { %v3808_v44 = vpack.c.bf16 %v3792_v24, %v3791_v47  ;;  %v5758_v47 = vld [vmem:[%s6233_s12 + $0x20] sm:$0xff]  }
 0x3e8   : > { %v3807_v55 = vpack.c.bf16 %v3790_v25, %v3789_v15  ;;  %v4118_v24 = vunpack.c.l.bf16 %v5758_v47 }
 0x3ea   : > { %5274 = vmatprep.mubr.bf16.mxu0 %v3807_v55  ;;  %v4121_v55 = vunpack.c.h.bf16 %v5757_v34 }
 0x3eb   : > { %5275 = vmatmul.mubr.bf16.gmra.mrb[92].mxu0 %v3808_v44 }
 0x486   : > { %v5248_v53 = vpop.f32.mrb[64].mxu0 }
 0x487   : > { %v4042_v39 = vmul.f32 %v5248_v53, %v6747_v36  ;;  %v3907_v13 = vpop.f32.mrb[65].mxu0 }
 0x488   : > { %v4040_v4 = vmul.f32 %v6747_v36, %v3907_v13  ;;  %v5249_v9 = vpop.f32.mrb[66].mxu0 }
 0x489   : > { %v4080_v49 = vadd.f32 %v6752_v30, %v4042_v39  ;;  %v4043_v27 = vmul.f32 %v5249_v9, %v6747_v36  ;;  %v3910_v14 = vpop.f32.mrb[67].mxu0  ;;  %v4119_v39 = vunpack.c.h.bf16 %v5758_v47 }
 0x48a   : > { %v4078_v60 = vadd.f32 %v6752_v30, %v4040_v4  ;;  %v4041_v29 = vmul.f32 %v6747_v36, %v3910_v14 }
 0x48b   : > { %v4144_v11 = vadd.f32 %v4112_v59, %v4080_v49  ;;  %v4081_v20 = vadd.f32 %v6752_v30, %v4043_v27 }
 0x48c   : > { %v4142_v19 = vadd.f32 %v4110_v18, %v4078_v60  ;;  %v4079_v31 = vadd.f32 %v6752_v30, %v4041_v29  ;;  %v5759_v29 = vld [vmem:[%s6233_s12 + $0x38] sm:$0xff]  }
 0x48d   : > { %v4176_v56 = vmax.f32 %v4144_v11, 0.0  ;;  %v4145_v22 = vadd.f32 %v4113_v41, %v4081_v20  ;;  %v4124_v11 = vunpack.c.l.bf16 %v5759_v29  ;;  %v4125_v33 = vunpack.c.h.bf16 %v5759_v29 }
 0x48e   : > { %v4174_v45 = vmax.f32 %v4142_v19, 0.0  ;;  %v4143_v1 = vadd.f32 %v4111_v50, %v4079_v31  ;;  %v5252_v37 = vpop.f32.mrb[68].mxu0 }
 0x48f   : > { %4208 = vst [vmem:[%s6766_s21 + $0x10] sm:$0xff] %v4176_v56  ;;  %v4177_v38 = vmax.f32 %v4145_v22, 0.0  ;;  %v4046_v7 = vmul.f32 %v5252_v37, %v6747_v36  ;;  %v3923_v57 = vpop.f32.mrb[69].mxu0  ;;  %v5760_v56 = vld [vmem:[%s6233_s12 + $0x30] sm:$0xff]  }
 0x490   : > { %4206 = vst [vmem:[%s6766_s21] sm:$0xff] %v4174_v45  ;;  %v4175_v63 = vmax.f32 %v4143_v1, 0.0  ;;  %v4044_v23 = vmul.f32 %v6747_v36, %v3923_v57  ;;  %v5253_v0 = vpop.f32.mrb[70].mxu0  ;;  %v4122_v22 = vunpack.c.l.bf16 %v5760_v56  ;;  %v4123_v57 = vunpack.c.h.bf16 %v5760_v56 }
 0x491   : > { %4209 = vst [vmem:[%s6766_s21 + $0x18] sm:$0xff] %v4177_v38  ;;  %v4084_v6 = vadd.f32 %v6752_v30, %v4046_v7  ;;  %v4047_v12 = vmul.f32 %v5253_v0, %v6747_v36  ;;  %v3926_v40 = vpop.f32.mrb[71].mxu0 }
 0x492   : > { %4207 = vst [vmem:[%s6766_s21 + $0x8] sm:$0xff] %v4175_v63  ;;  %v4082_v8 = vadd.f32 %v6752_v30, %v4044_v23  ;;  %v4045_v46 = vmul.f32 %v6747_v36, %v3926_v40 }
 0x493   : > { %v4148_v10 = vadd.f32 %v4116_v61, %v4084_v6  ;;  %v4085_v5 = vadd.f32 %v6752_v30, %v4047_v12 }
 0x494   : > { %v4146_v16 = vadd.f32 %v4114_v42, %v4082_v8  ;;  %v4083_v21 = vadd.f32 %v6752_v30, %v4045_v46  ;;  %v5761_v46 = vld [vmem:[%s6233_s12 + $0x48] sm:$0xff]  }
 0x495   : > { %v4180_v43 = vmax.f32 %v4148_v10, 0.0  ;;  %v4149_v35 = vadd.f32 %v4117_v2, %v4085_v5  ;;  %v4128_v10 = vunpack.c.l.bf16 %v5761_v46  ;;  %v4129_v34 = vunpack.c.h.bf16 %v5761_v46 }
 0x496   : > { %v4178_v17 = vmax.f32 %v4146_v16, 0.0  ;;  %v4147_v3 = vadd.f32 %v4115_v28, %v4083_v21  ;;  %v5256_v52 = vpop.f32.mrb[72].mxu0 }
 0x497   : > { %4212 = vst [vmem:[%s6766_s21 + $0x30] sm:$0xff] %v4180_v43  ;;  %v4181_v51 = vmax.f32 %v4149_v35, 0.0  ;;  %v4050_v26 = vmul.f32 %v5256_v52, %v6747_v36  ;;  %v3939_v54 = vpop.f32.mrb[73].mxu0  ;;  %v5762_v43 = vld [vmem:[%s6233_s12 + $0x40] sm:$0xff]  }
 0x498   : > { %4210 = vst [vmem:[%s6766_s21 + $0x20] sm:$0xff] %v4178_v17  ;;  %v4179_v15 = vmax.f32 %v4147_v3, 0.0  ;;  %v4048_v25 = vmul.f32 %v6747_v36, %v3939_v54  ;;  %v5257_v44 = vpop.f32.mrb[74].mxu0  ;;  %v4126_v35 = vunpack.c.l.bf16 %v5762_v43  ;;  %v4127_v54 = vunpack.c.h.bf16 %v5762_v43 }
 0x499   : > { %4213 = vst [vmem:[%s6766_s21 + $0x38] sm:$0xff] %v4181_v51  ;;  %v4088_v53 = vadd.f32 %v6752_v30, %v4050_v26  ;;  %v4051_v32 = vmul.f32 %v5257_v44, %v6747_v36  ;;  %v3942_v59 = vpop.f32.mrb[75].mxu0 }
 0x49a   : > { %4211 = vst [vmem:[%s6766_s21 + $0x28] sm:$0xff] %v4179_v15  ;;  %v4086_v13 = vadd.f32 %v6752_v30, %v4048_v25  ;;  %v4049_v48 = vmul.f32 %v6747_v36, %v3942_v59 }
 0x49b   : > { %v4152_v18 = vadd.f32 %v4120_v58, %v4088_v53  ;;  %v4089_v4 = vadd.f32 %v6752_v30, %v4051_v32 }
 0x49c   : > { %v4150_v9 = vadd.f32 %v4118_v24, %v4086_v13  ;;  %v4087_v41 = vadd.f32 %v6752_v30, %v4049_v48  ;;  %v5763_v48 = vld [vmem:[%s6233_s12 + $0x58] sm:$0xff]  }
 0x49d   : > { %v4184_v49 = vmax.f32 %v4152_v18, 0.0  ;;  %v4153_v27 = vadd.f32 %v4121_v55, %v4089_v4  ;;  %v4132_v18 = vunpack.c.l.bf16 %v5763_v48  ;;  %v4133_v29 = vunpack.c.h.bf16 %v5763_v48 }
 0x49e   : > { %v4182_v14 = vmax.f32 %v4150_v9, 0.0  ;;  %v4151_v50 = vadd.f32 %v4119_v39, %v4087_v41  ;;  %v5260_v60 = vpop.f32.mrb[76].mxu0 }
 0x49f   : > { %4216 = vst [vmem:[%s6766_s21 + $0x50] sm:$0xff] %v4184_v49  ;;  %v4185_v20 = vmax.f32 %v4153_v27, 0.0  ;;  %v4054_v19 = vmul.f32 %v5260_v60, %v6747_v36  ;;  %v3955_v31 = vpop.f32.mrb[77].mxu0  ;;  %v5764_v49 = vld [vmem:[%s6233_s12 + $0x50] sm:$0xff]  }
 0x4a0   : > { %4214 = vst [vmem:[%s6766_s21 + $0x40] sm:$0xff] %v4182_v14  ;;  %v4183_v45 = vmax.f32 %v4151_v50, 0.0  ;;  %v4052_v1 = vmul.f32 %v6747_v36, %v3955_v31  ;;  %v5261_v37 = vpop.f32.mrb[78].mxu0  ;;  %v4130_v27 = vunpack.c.l.bf16 %v5764_v49  ;;  %v4131_v31 = vunpack.c.h.bf16 %v5764_v49 }
 0x4a1   : > { %4217 = vst [vmem:[%s6766_s21 + $0x58] sm:$0xff] %v4185_v20  ;;  %v4092_v61 = vadd.f32 %v6752_v30, %v4054_v19  ;;  %v4055_v38 = vmul.f32 %v5261_v37, %v6747_v36  ;;  %v3958_v7 = vpop.f32.mrb[79].mxu0 }
 0x4a2   : > { %4215 = vst [vmem:[%s6766_s21 + $0x48] sm:$0xff] %v4183_v45  ;;  %v4090_v62 = vadd.f32 %v6752_v30, %v4052_v1  ;;  %v4053_v42 = vmul.f32 %v6747_v36, %v3958_v7 }
 0x4a3   : > { %v4156_v63 = vadd.f32 %v4124_v11, %v4092_v61  ;;  %v4093_v23 = vadd.f32 %v6752_v30, %v4055_v38 }
 0x4a4   : > { %v4154_v0 = vadd.f32 %v4122_v22, %v4090_v62  ;;  %v4091_v2 = vadd.f32 %v6752_v30, %v4053_v42  ;;  %v5765_v42 = vld [vmem:[%s6233_s12 + $0x68] sm:$0xff]  }
 0x4a5   : > { %v4188_v6 = vmax.f32 %v4156_v63, 0.0  ;;  %v4157_v12 = vadd.f32 %v4125_v33, %v4093_v23  ;;  %v4136_v63 = vunpack.c.l.bf16 %v5765_v42  ;;  %v4137_v46 = vunpack.c.h.bf16 %v5765_v42 }
 0x4a6   : > { %v4186_v40 = vmax.f32 %v4154_v0, 0.0  ;;  %v4155_v28 = vadd.f32 %v4123_v57, %v4091_v2  ;;  %v5264_v8 = vpop.f32.mrb[80].mxu0 }
 0x4a7   : > { %4220 = vst [vmem:[%s6766_s21 + $0x70] sm:$0xff] %v4188_v6  ;;  %v4189_v5 = vmax.f32 %v4157_v12, 0.0  ;;  %v4058_v16 = vmul.f32 %v5264_v8, %v6747_v36  ;;  %v3971_v21 = vpop.f32.mrb[81].mxu0  ;;  %v5766_v6 = vld [vmem:[%s6233_s12 + $0x60] sm:$0xff]  }
 0x4a8   : > { %4218 = vst [vmem:[%s6766_s21 + $0x60] sm:$0xff] %v4186_v40  ;;  %v4187_v17 = vmax.f32 %v4155_v28, 0.0  ;;  %v4056_v3 = vmul.f32 %v6747_v36, %v3971_v21  ;;  %v5265_v52 = vpop.f32.mrb[82].mxu0  ;;  %v4134_v12 = vunpack.c.l.bf16 %v5766_v6  ;;  %v4135_v21 = vunpack.c.h.bf16 %v5766_v6 }
 0x4a9   : > { %4221 = vst [vmem:[%s6766_s21 + $0x78] sm:$0xff] %v4189_v5  ;;  %v4096_v58 = vadd.f32 %v6752_v30, %v4058_v16  ;;  %v4059_v51 = vmul.f32 %v5265_v52, %v6747_v36  ;;  %v3974_v26 = vpop.f32.mrb[83].mxu0 }
 0x4aa   : > { %4219 = vst [vmem:[%s6766_s21 + $0x68] sm:$0xff] %v4187_v17  ;;  %v4094_v47 = vadd.f32 %v6752_v30, %v4056_v3  ;;  %v4057_v24 = vmul.f32 %v6747_v36, %v3974_v26 }
 0x4ab   : > { %v4160_v15 = vadd.f32 %v4128_v10, %v4096_v58  ;;  %v4097_v25 = vadd.f32 %v6752_v30, %v4059_v51 }
 0x4ac   : > { %v4158_v44 = vadd.f32 %v4126_v35, %v4094_v47  ;;  %v4095_v55 = vadd.f32 %v6752_v30, %v4057_v24  ;;  %v5767_v24 = vld [vmem:[%s6233_s12 + $0x78] sm:$0xff]  }
 0x4ad   : > { %v4192_v53 = vmax.f32 %v4160_v15, 0.0  ;;  %v4161_v32 = vadd.f32 %v4129_v34, %v4097_v25  ;;  %v4140_v15 = vunpack.c.l.bf16 %v5767_v24  ;;  %v4141_v48 = vunpack.c.h.bf16 %v5767_v24 }
 0x4ae   : > { %v4190_v59 = vmax.f32 %v4158_v44, 0.0  ;;  %v4159_v39 = vadd.f32 %v4127_v54, %v4095_v55  ;;  %v5268_v13 = vpop.f32.mrb[84].mxu0 }
 0x4af   : > { %4224 = vst [vmem:[%s6766_s21 + $0x90] sm:$0xff] %v4192_v53  ;;  %v4193_v4 = vmax.f32 %v4161_v32, 0.0  ;;  %v4062_v9 = vmul.f32 %v5268_v13, %v6747_v36  ;;  %v3987_v41 = vpop.f32.mrb[85].mxu0  ;;  %v5768_v53 = vld [vmem:[%s6233_s12 + $0x70] sm:$0xff]   ;;  %s4485_s12 = sshll.u32 %s6045_s17, 12  ;;  %s4239_s17 = scalar_lea.sflag [#allocation5], %s6229_s10 }
 0x4b0   : > { %4222 = vst [vmem:[%s6766_s21 + $0x80] sm:$0xff] %v4190_v59  ;;  %v4191_v14 = vmax.f32 %v4159_v39, 0.0  ;;  %v4060_v50 = vmul.f32 %v6747_v36, %v3987_v41  ;;  %v5269_v60 = vpop.f32.mrb[86].mxu0  ;;  %v4138_v32 = vunpack.c.l.bf16 %v5768_v53  ;;  %v4139_v41 = vunpack.c.h.bf16 %v5768_v53  ;;  %s6871_s9 = scalar_lea.hbm %s6956_s26, %s4485_s12 }
 0x4b1   : > { %4225 = vst [vmem:[%s6766_s21 + $0x98] sm:$0xff] %v4193_v4  ;;  %v4100_v11 = vadd.f32 %v6752_v30, %v4062_v9  ;;  %v4063_v20 = vmul.f32 %v5269_v60, %v6747_v36  ;;  %v3990_v19 = vpop.f32.mrb[87].mxu0 }
 0x4b2   : > { %4223 = vst [vmem:[%s6766_s21 + $0x88] sm:$0xff] %v4191_v14  ;;  %v4098_v56 = vadd.f32 %v6752_v30, %v4060_v50  ;;  %v4061_v22 = vmul.f32 %v6747_v36, %v3990_v19 }
 0x4b3   : > { %v4164_v45 = vadd.f32 %v4132_v18, %v4100_v11  ;;  %v4101_v1 = vadd.f32 %v6752_v30, %v4063_v20 }
 0x4b4   : > { %v4162_v37 = vadd.f32 %v4130_v27, %v4098_v56  ;;  %v4099_v33 = vadd.f32 %v6752_v30, %v4061_v22 }
 0x4b5   : > { %v4196_v61 = vmax.f32 %v4164_v45, 0.0  ;;  %v4165_v38 = vadd.f32 %v4133_v29, %v4101_v1 }
 0x4b6   : > { %v4194_v7 = vmax.f32 %v4162_v37, 0.0  ;;  %v4163_v57 = vadd.f32 %v4131_v31, %v4099_v33  ;;  %v5272_v62 = vpop.f32.mrb[88].mxu0 }
 0x4b7   : > { %4228 = vst [vmem:[%s6766_s21 + $0xb0] sm:$0xff] %v4196_v61  ;;  %v4197_v23 = vmax.f32 %v4165_v38, 0.0  ;;  %v4066_v0 = vmul.f32 %v5272_v62, %v6747_v36  ;;  %v4003_v2 = vpop.f32.mrb[89].mxu0 }
 0x4b8   : > { %4226 = vst [vmem:[%s6766_s21 + $0xa0] sm:$0xff] %v4194_v7  ;;  %v4195_v40 = vmax.f32 %v4163_v57, 0.0  ;;  %v4064_v28 = vmul.f32 %v6747_v36, %v4003_v2  ;;  %v5273_v8 = vpop.f32.mrb[90].mxu0 }
 0x4b9   : > { %4229 = vst [vmem:[%s6766_s21 + $0xb8] sm:$0xff] %v4197_v23  ;;  %v4104_v10 = vadd.f32 %v6752_v30, %v4066_v0  ;;  %v4067_v5 = vmul.f32 %v5273_v8, %v6747_v36  ;;  %v4006_v16 = vpop.f32.mrb[91].mxu0 }
 0x4ba   : > { %4227 = vst [vmem:[%s6766_s21 + $0xa8] sm:$0xff] %v4195_v40  ;;  %v4102_v43 = vadd.f32 %v6752_v30, %v4064_v28  ;;  %v4065_v35 = vmul.f32 %v6747_v36, %v4006_v16 }
 0x4bb   : > { %v4168_v17 = vadd.f32 %v4136_v63, %v4104_v10  ;;  %v4105_v3 = vadd.f32 %v6752_v30, %v4067_v5 }
 0x4bc   : > { %v4166_v52 = vadd.f32 %v4134_v12, %v4102_v43  ;;  %v4103_v34 = vadd.f32 %v6752_v30, %v4065_v35 }
 0x4bd   : > { %v4200_v58 = vmax.f32 %v4168_v17, 0.0  ;;  %v4169_v51 = vadd.f32 %v4137_v46, %v4105_v3 }
 0x4be   : > { %v4198_v26 = vmax.f32 %v4166_v52, 0.0  ;;  %v4167_v54 = vadd.f32 %v4135_v21, %v4103_v34  ;;  %v5276_v47 = vpop.f32.mrb[92].mxu0 }
 0x4bf   : > { %4232 = vst [vmem:[%s6766_s21 + $0xd0] sm:$0xff] %v4200_v58  ;;  %v4201_v25 = vmax.f32 %v4169_v51, 0.0  ;;  %v4070_v44 = vmul.f32 %v5276_v47, %v6747_v36  ;;  %v4019_v55 = vpop.f32.mrb[93].mxu0 }
 0x4c0   : > { %4230 = vst [vmem:[%s6766_s21 + $0xc0] sm:$0xff] %v4198_v26  ;;  %v4199_v59 = vmax.f32 %v4167_v54, 0.0  ;;  %v4068_v39 = vmul.f32 %v6747_v36, %v4019_v55  ;;  %v5277_v13 = vpop.f32.mrb[94].mxu0 }
 0x4c1   : > { %4233 = vst [vmem:[%s6766_s21 + $0xd8] sm:$0xff] %v4201_v25  ;;  %v4108_v18 = vadd.f32 %v6752_v30, %v4070_v44  ;;  %v4071_v4 = vmul.f32 %v5277_v13, %v6747_v36  ;;  %v4022_v9 = vpop.f32.mrb[95].mxu0 }
 0x4c2   : > { %4231 = vst [vmem:[%s6766_s21 + $0xc8] sm:$0xff] %v4199_v59  ;;  %v4106_v49 = vadd.f32 %v6752_v30, %v4068_v39  ;;  %v4069_v27 = vmul.f32 %v6747_v36, %v4022_v9 }
 0x4c3   : > { %v4172_v14 = vadd.f32 %v4140_v15, %v4108_v18  ;;  %v4109_v50 = vadd.f32 %v6752_v30, %v4071_v4 }
 0x4c4   : > { %v4170_v60 = vadd.f32 %v4138_v32, %v4106_v49  ;;  %v4107_v29 = vadd.f32 %v6752_v30, %v4069_v27 }
 0x4c5   : > { %v4204_v11 = vmax.f32 %v4172_v14, 0.0  ;;  %v4173_v20 = vadd.f32 %v4141_v48, %v4109_v50 }
 0x4c6   : > { %v4202_v19 = vmax.f32 %v4170_v60, 0.0  ;;  %v4171_v31 = vadd.f32 %v4139_v41, %v4107_v29 }
 0x4c7   : > { %4236 = vst [vmem:[%s6766_s21 + $0xf0] sm:$0xff] %v4204_v11  ;;  %v4205_v56 = vmax.f32 %v4173_v20, 0.0 }
 0x4c8   : > { %4234 = vst [vmem:[%s6766_s21 + $0xe0] sm:$0xff] %v4202_v19  ;;  %v4203_v36 = vmax.f32 %v4171_v31, 0.0 }
 0x4c9   : > { %4237 = vst [vmem:[%s6766_s21 + $0xf8] sm:$0xff] %v4205_v56 }
 0x4ca   : > { %4235 = vst [vmem:[%s6766_s21 + $0xe8] sm:$0xff] %v4203_v36 }
 0x4cb   : > { %5896 = shalt.err (!%p5893_p4)
}
 0x4cc   : > { %s5897_s25 = scalar_lea.hbm %s6871_s9, 4096  ;;  %s5901_s21 = scalar_lea.hbm %s6956_s26, 8192 }
 0x4cd   : > { %p5898_p9 = scmp.ne.s32.totalorder %s6871_s9, %s5897_s25  ;;  %p5902_p8 = scmp.lt.u32.totalorder %s6871_s9, %s6956_s26 }
 0x4ce   : > { %p5903_p13 = scmp.lt.u32.totalorder %s5901_s21, %s5897_s25  ;;  %p5905_p10 = scmp.lt.u32.totalorder %s5897_s25, %s6871_s9 }
 0x4cf   : > { %p5899_p0 = pnand %p5898_p9, %p6178_p5 }
 0x4d0   : > { %p5904_p6 = por %p5903_p13, %p5902_p8 }
 0x4d1   : > { %p5900_p11 = pneg %p5899_p0 }
 0x4d2   : > { %p5906_p3 = por %p5905_p10, %p5904_p6 }
 0x4d4   : > { %p5907_p7 = pnand %p5906_p3, %p5900_p11 }
 0x4d6   : > { %5910 = shalt.err (!%p5907_p7)
}
 0x4d7   : > { %s5967_s29 = smov 128   ;;  %s5968_s24 = smov 8  }
 0x4d8   : > { %5564 = dma.vmem_to_hbm [thread:$0]  (%p6178_p5), %s6873_s30, 4096, %s6871_s9, %s4239_s17, %s5967_s29, %s5967_s29, %s5968_s24  }
 0x4d9 PF: > { %s6957_s18 = sld [smem:[#allocation16_spill]]  ;;  %s6958_s28 = sld [smem:[#allocation17_spill]] }
 0x4da   : > { %p6960_p1 = scmp.ge.s32.totalorder %s5957_s16, 2 }
 0x4df   : > { %s4267_s27 = sand.u32 1, %s6957_s18   ;;  %p6959_p12 = scmp.ne.s32.totalorder %s6958_s28, 0 }
 0x4e0   : > { %s4268_s25 = scalar_lea.sflag [#allocation5], %s4267_s27 }
 0x4e1   : > { %p5581_p2 = pnand %p6960_p1, %p6959_p12 }
 0x4e3   : > { %5940 = dma.done.wait (!%p5581_p2), %s4268_s25, 4096  }
 0x4e4   : > { %5942 = vsyncadd (!%p5581_p2), %s4268_s25, 4294963200  ;;  %s6961_s23 = smov %s6174_s13  ;;  %p25_p4 = scmp.ge.s32.totalorder %s6164_s22, 4  }
 0x4e5   : > { %s6962_s13 = smov %s5949_s14  ;;  %s6963_s14 = smov %s5953_s15 }
 0x4e6   : > { %s6964_s15 = smov %s6961_s23  ;;  %s6965_s16 = smov %s6164_s22 }
 0x4e7   :  { %27 = sbr.rel (!%p25_p4) target bundleno = 10 (0xa), region = 127 }
 0x4ee   :  { %4273 = vsyncpa [#allocation4], 1 }
 0x4ef   :  { %4275 = vsyncpa [#allocation4 + $0x1], 1 }
 0x4f0   :  { %4276 = vsyncpa [#allocation7], 1 }
 0x4f1   :  { %4277 = vsyncpa [#allocation10], 1 }
 0x4f2   :  { %4278 = vsyncpa [#allocation5], 1 }
 0x4f3   :  { %4280 = vsyncpa [#allocation5 + $0x1], 1 }

</bundles_post_ra>
